<compile_context>
chip_gen: v7x
topology: tpu7x:2x2x1
jax: 0.10.0
libtpu: 0.0.40
codegen_flags: <defaults>
</compile_context>

<pallas_src>
import functools

import jax
import jax.numpy as jnp
from jax import lax
from jax.experimental import pallas as pl
from jax.experimental.pallas import tpu as pltpu


def _round_up(x, m):
    return (x + m - 1) // m * m


def _cdiv(a, b):
    return -(-a // b)


def _vmem_capacity_bytes():
    try:
        return int(pltpu.get_tpu_info().vmem_capacity_bytes)
    except Exception:
        return 64 * 1024 * 1024


# --------------------------------------------------------------------------
# Pallas kernel: pro1 -> pro2 -> [GRUCell -> pro3 store -> pro2]*pred_len
# --------------------------------------------------------------------------
def _decoder_kernel(
    xcat_ref,                 # (TN, Cp)  bf16  [dec | Z] lane-padded
    w1_ref, b1_ref,           # pro1: (Cp, Hp) bf16, (1, Hp) f32
    w2_ref, b2_ref,           # pro2: (Hp, Hp) bf16, (1, Hp) f32
    wi_ref, bi_ref,           # fused GRU input weights/bias: (Hp, 3Hp) bf16, (1, 3Hp) f32
    wh_ref, bhn_ref,          # fused GRU hidden weights: (Hp, 3Hp) bf16, b_hn: (1, Hp) f32
    w3_ref, b3_ref,           # pro3: (Hp, Fp) bf16, (1, Fp) f32
    out_ref,                  # (pred_len, TN, F)  f32, F un-padded
    *,
    pred_len: int,
    hp: int,
    f_out: int,
):
    f32, bf16 = jnp.float32, jnp.bfloat16
    tn = xcat_ref.shape[0]
    fp = w3_ref.shape[1]

    def mm(a_f32, w_bf16):
        # bf16 x bf16 -> f32 accumulate on the MXU.
        return jnp.dot(a_f32.astype(bf16), w_bf16, preferred_element_type=f32)

    # Load weights once (VMEM-resident across the whole kernel).
    w1 = w1_ref[...]
    w2 = w2_ref[...]
    wi = wi_ref[...]
    wh = wh_ref[...]
    w3 = w3_ref[...]
    # Hoist bias broadcasts out of the recurrence (no CSE for broadcast_in_dim).
    b1b = jnp.broadcast_to(b1_ref[...], (tn, hp))
    b2b = jnp.broadcast_to(b2_ref[...], (tn, hp))
    bib = jnp.broadcast_to(bi_ref[...], (tn, 3 * hp))
    bhnb = jnp.broadcast_to(bhn_ref[...], (tn, hp))
    b3b = jnp.broadcast_to(b3_ref[...], (tn, fp))

    # pro1: Linear(2H -> H) + ReLU   (xcat is already bf16)
    h0 = jnp.maximum(
        jnp.dot(xcat_ref[...], w1, preferred_element_type=f32) + b1b, 0.0)
    # pro2: Linear(H -> H) + ReLU
    inp0 = jnp.maximum(mm(h0, w2) + b2b, 0.0)

    def body(t, carry):
        h, inp = carry
        # gi chunks: [r | z | n] with biases [b_ir+b_hr | b_iz+b_hz | b_in]
        gi = mm(inp, wi) + bib                           # (TN, 3Hp)
        gh = mm(h, wh)                                   # (TN, 3Hp)  (no bias)
        r = jax.nn.sigmoid(gi[:, 0:hp] + gh[:, 0:hp])
        z = jax.nn.sigmoid(gi[:, hp:2 * hp] + gh[:, hp:2 * hp])
        n = jnp.tanh(gi[:, 2 * hp:] + r * (gh[:, 2 * hp:] + bhnb))
        h_new = n + z * (h - n)                          # == (1 - z) * n + z * h
        # pro3 for this step; store only the F valid lanes (un-padded writeback).
        y = mm(h_new, w3) + b3b                          # (TN, Fp)
        out_ref[t] = y[:, :f_out]
        inp_new = jnp.maximum(mm(h_new, w2) + b2b, 0.0)
        return (h_new, inp_new)

    lax.fori_loop(0, pred_len, body, (h0, inp0), unroll=min(pred_len, 4))


# --------------------------------------------------------------------------
# Wrapper: pack/pad params, derive row tile from VMEM budget, call pallas
# --------------------------------------------------------------------------
def decoder_forward(dec_in, Z, params, *, hidden_dim, feat_out, pred_len, K,
                    row_tile=1024):
    H, F = hidden_dim, feat_out
    Hp = _round_up(H, 128)
    Cp = _round_up(2 * H, 128)
    Fp = _round_up(F, 128)

    z_is_3d = (Z.ndim == 3)
    B = dec_in.shape[0]
    if z_is_3d:
        dec_part = jnp.repeat(dec_in[:, None, :], K, axis=1).reshape(B * K, H)
        z_part = Z.reshape(B * K, H)
    else:
        dec_part = dec_in
        z_part = Z
    N = dec_part.shape[0]

    def pad_f32(a, r, c):
        a = a.astype(jnp.float32)
        return jnp.pad(a, ((0, r - a.shape[0]), (0, c - a.shape[1])))

    def pad_bf16(a, r, c):
        return pad_f32(a, r, c).astype(jnp.bfloat16)

    p = params
    # Weights in bf16 (MXU native); biases stay f32 (added post-accumulate).
    w1 = pad_bf16(p["w1"], Cp, Hp)
    b1 = pad_f32(p["b1"], 1, Hp)
    w2 = pad_bf16(p["w2"], Hp, Hp)
    b2 = pad_f32(p["b2"], 1, Hp)
    # Fused GRU weights, columns [r | z | n], each chunk Hp wide.
    wi = jnp.concatenate(
        [pad_bf16(p["w_ir"], Hp, Hp), pad_bf16(p["w_iz"], Hp, Hp),
         pad_bf16(p["w_in"], Hp, Hp)], axis=1)                          # (Hp, 3Hp)
    wh = jnp.concatenate(
        [pad_bf16(p["w_hr"], Hp, Hp), pad_bf16(p["w_hz"], Hp, Hp),
         pad_bf16(p["w_hn"], Hp, Hp)], axis=1)                          # (Hp, 3Hp)
    # b_ir+b_hr and b_iz+b_hz pre-summed; b_hn stays on the hidden path
    # (it sits inside r * (W_hn h + b_hn)).
    bi = jnp.concatenate(
        [pad_f32(p["b_ir"] + p["b_hr"], 1, Hp),
         pad_f32(p["b_iz"] + p["b_hz"], 1, Hp),
         pad_f32(p["b_in"], 1, Hp)], axis=1)                            # (1, 3Hp)
    bhn = pad_f32(p["b_hn"], 1, Hp)                                     # (1, Hp)
    w3 = pad_bf16(p["w3"], Hp, Fp)
    b3 = pad_f32(p["b3"], 1, Fp)

    # ---- per-chip VMEM budget -> row tile --------------------------------
    vmem_cap = _vmem_capacity_bytes()                   # 128 MiB v5e/v6e, 64 MiB v7x
    vmem_limit = min(int(vmem_cap * 0.8), 100 * 1024 * 1024)

    def vmem_bytes(a):                                   # (1, X) pads to 8 sublanes
        return max(a.shape[0], 8) * a.shape[1] * a.dtype.itemsize

    weight_bytes = 2 * sum(vmem_bytes(a) for a in        # double-buffered by default
                           (w1, b1, w2, b2, wi, bi, wh, bhn, w3, b3))
    per_row = (2 * Cp * 2                                 # xcat block (bf16, x2 buffers)
               + 2 * pred_len * Fp * 4                    # out block (lane-padded in VMEM, x2)
               + 16 * Hp * 4)                             # live activations (gi/gh/h/inp/...)
    budget = vmem_limit - weight_bytes - 4 * 1024 * 1024  # slack for compiler scratch
    tn_budget = max(16, (budget // per_row) // 16 * 16)
    tn_split = _round_up(_cdiv(N, 2), 16)                 # >= 2 grid steps when N allows
    TN = int(max(16, min(row_tile, tn_budget, tn_split)))
    Np = _round_up(max(N, 1), TN)

    # Inputs: [dec | Z] contiguous width 2H, padded once to Cp, bf16.
    xcat = pad_bf16(jnp.concatenate([dec_part, z_part], axis=1), Np, Cp)  # (Np, Cp)

    kernel = functools.partial(_decoder_kernel, pred_len=pred_len, hp=Hp, f_out=F)

    def full_spec(a):
        return pl.BlockSpec(a.shape, lambda i: (0,) * a.ndim)

    out = pl.pallas_call(
        kernel,
        out_shape=jax.ShapeDtypeStruct((pred_len, Np, F), jnp.float32),
        grid_spec=pltpu.PrefetchScalarGridSpec(
            num_scalar_prefetch=0,
            grid=(Np // TN,),
            in_specs=[
                pl.BlockSpec((TN, Cp), lambda i: (i, 0)),
                full_spec(w1), full_spec(b1),
                full_spec(w2), full_spec(b2),
                full_spec(wi), full_spec(bi),
                full_spec(wh), full_spec(bhn),
                full_spec(w3), full_spec(b3),
            ],
            out_specs=pl.BlockSpec((pred_len, TN, F), lambda i: (0, i, 0)),
        ),
        compiler_params=pltpu.CompilerParams(
            dimension_semantics=("parallel",),
            vmem_limit_bytes=int(vmem_limit),
        ),
    )(xcat, w1, b1, w2, b2, wi, bi, wh, bhn, w3, b3)

    out = out[:, :N, :]                                   # drop row padding
    if z_is_3d:
        out = out.reshape(pred_len, B, K, F)
    return out


# --------------------------------------------------------------------------
# Pure-JAX f32 reference (mirrors the PyTorch forward) for correctness check
# --------------------------------------------------------------------------
def decoder_reference(dec_in, Z, p, *, hidden_dim, feat_out, pred_len, K):
    if Z.ndim == 3:
        dec_rep = jnp.repeat(dec_in[:, None, :], K, axis=1)
        dec_h = jnp.concatenate([dec_rep, Z], axis=-1)
        x = dec_h.reshape(-1, 2 * hidden_dim)
    else:
        x = jnp.concatenate([dec_in, Z], axis=-1)

    h = jax.nn.relu(x @ p["w1"] + p["b1"])
    inp = jax.nn.relu(h @ p["w2"] + p["b2"])
    outs = []
    for _ in range(pred_len):
        r = jax.nn.sigmoid(inp @ p["w_ir"] + p["b_ir"] + h @ p["w_hr"] + p["b_hr"])
        z = jax.nn.sigmoid(inp @ p["w_iz"] + p["b_iz"] + h @ p["w_hz"] + p["b_hz"])
        n = jnp.tanh(inp @ p["w_in"] + p["b_in"] + r * (h @ p["w_hn"] + p["b_hn"]))
        h = (1.0 - z) * n + z * h
        inp = jax.nn.relu(h @ p["w2"] + p["b2"])
        outs.append(h)
    out = jnp.stack(outs, axis=0)
    if Z.ndim == 3:
        out = out.reshape(pred_len, -1, K, hidden_dim)
    return out @ p["w3"] + p["b3"]


# --------------------------------------------------------------------------
# Deterministic parameter initialization (synthetic, shapes from __init__)
# --------------------------------------------------------------------------
def init_params(key, hidden_dim, feat_out):
    H, F = hidden_dim, feat_out
    ks = jax.random.split(key, 19)
    s = 0.1

    def w(k, shape):
        return (s * jax.random.normal(k, shape)).astype(jnp.float32)

    return {
        # pro1: Linear(2H, H)
        "w1": w(ks[0], (2 * H, H)), "b1": w(ks[1], (1, H)),
        # pro2: Linear(H, H)
        "w2": w(ks[2], (H, H)), "b2": w(ks[3], (1, H)),
        # GRUCell weight_ih split into r/z/n chunks, stored as (H, H)
        "w_ir": w(ks[4], (H, H)), "w_iz": w(ks[5], (H, H)), "w_in": w(ks[6], (H, H)),
        "b_ir": w(ks[7], (1, H)), "b_iz": w(ks[8], (1, H)), "b_in": w(ks[9], (1, H)),
        # GRUCell weight_hh
        "w_hr": w(ks[10], (H, H)), "w_hz": w(ks[11], (H, H)), "w_hn": w(ks[12], (H, H)),
        "b_hr": w(ks[13], (1, H)), "b_hz": w(ks[14], (1, H)), "b_hn": w(ks[15], (1, H)),
        # pro3: Linear(H, F)
        "w3": w(ks[16], (H, F)), "b3": w(ks[17], (1, F)),
    }


if __name__ == "__main__":
    hidden_dim = 32
    feat_out = 8
    pred_len = 4
    K = 4
    B = 2

    root = jax.random.PRNGKey(0)
    k_p, k_x, k_z = jax.random.split(root, 3)

    params = init_params(k_p, hidden_dim, feat_out)
    dec_in = jax.random.normal(k_x, (B, hidden_dim), dtype=jnp.float32)
    Z = jax.random.normal(k_z, (B, K, hidden_dim), dtype=jnp.float32)

    out = decoder_forward(
        dec_in, Z, params,
        hidden_dim=hidden_dim, feat_out=feat_out, pred_len=pred_len, K=K,
    )
    out = jax.block_until_ready(out)

    ref = decoder_reference(
        dec_in, Z, params,
        hidden_dim=hidden_dim, feat_out=feat_out, pred_len=pred_len, K=K,
    )

    assert out.shape == (pred_len, B, K, feat_out), out.shape
    # bf16 matmul operands (f32 accumulate) -> looser tolerance than pure f32.
    max_err = float(jnp.max(jnp.abs(out - ref)))
    assert jnp.allclose(out, ref, atol=2e-2, rtol=2e-2), max_err
    print("KERNEL_OK")
</pallas_src>

<mosaic_0001>
module attributes {stable_mosaic.version = 11 : i64} {
  func.func @_decoder_kernel(%arg0: i32, %arg1: memref<16x128xbf16, #tpu.memory_space<vmem>>, %arg2: memref<128x128xbf16, #tpu.memory_space<vmem>>, %arg3: memref<1x128xf32, #tpu.memory_space<vmem>>, %arg4: memref<128x128xbf16, #tpu.memory_space<vmem>>, %arg5: memref<1x128xf32, #tpu.memory_space<vmem>>, %arg6: memref<128x384xbf16, #tpu.memory_space<vmem>>, %arg7: memref<1x384xf32, #tpu.memory_space<vmem>>, %arg8: memref<128x384xbf16, #tpu.memory_space<vmem>>, %arg9: memref<1x128xf32, #tpu.memory_space<vmem>>, %arg10: memref<128x128xbf16, #tpu.memory_space<vmem>>, %arg11: memref<1x128xf32, #tpu.memory_space<vmem>>, %arg12: memref<4x16x8xf32, #tpu.memory_space<vmem>>) attributes {dimension_semantics = [#tpu.dimension_semantics<parallel>], iteration_bounds = array<i64: 1>, scalar_prefetch = 0 : i64, scratch_operands = 0 : i64, tpu.core_type = #tpu.core_type<tc>, window_params = [{transform_indices = @transform_0, window_bounds = array<i64: 16, 128>}, {pipeline_mode = #tpu.pipeline_mode<synchronous>, transform_indices = @transform_1, window_bounds = array<i64: 128, 128>}, {pipeline_mode = #tpu.pipeline_mode<synchronous>, transform_indices = @transform_2, window_bounds = array<i64: 1, 128>}, {pipeline_mode = #tpu.pipeline_mode<synchronous>, transform_indices = @transform_3, window_bounds = array<i64: 128, 128>}, {pipeline_mode = #tpu.pipeline_mode<synchronous>, transform_indices = @transform_4, window_bounds = array<i64: 1, 128>}, {pipeline_mode = #tpu.pipeline_mode<synchronous>, transform_indices = @transform_5, window_bounds = array<i64: 128, 384>}, {pipeline_mode = #tpu.pipeline_mode<synchronous>, transform_indices = @transform_6, window_bounds = array<i64: 1, 384>}, {pipeline_mode = #tpu.pipeline_mode<synchronous>, transform_indices = @transform_7, window_bounds = array<i64: 128, 384>}, {pipeline_mode = #tpu.pipeline_mode<synchronous>, transform_indices = @transform_8, window_bounds = array<i64: 1, 128>}, {pipeline_mode = #tpu.pipeline_mode<synchronous>, transform_indices = @transform_9, window_bounds = array<i64: 128, 128>}, {pipeline_mode = #tpu.pipeline_mode<synchronous>, transform_indices = @transform_10, window_bounds = array<i64: 1, 128>}, {transform_indices = @transform_11, window_bounds = array<i64: 4, 16, 8>}]} {
    %c0 = arith.constant 0 : index
    %c0_0 = arith.constant 0 : index
    %0 = vector.load %arg2[%c0, %c0_0] : memref<128x128xbf16, #tpu.memory_space<vmem>>, vector<128x128xbf16>
    %c0_1 = arith.constant 0 : index
    %c0_2 = arith.constant 0 : index
    %1 = vector.load %arg4[%c0_1, %c0_2] : memref<128x128xbf16, #tpu.memory_space<vmem>>, vector<128x128xbf16>
    %c0_3 = arith.constant 0 : index
    %c0_4 = arith.constant 0 : index
    %2 = vector.load %arg6[%c0_3, %c0_4] : memref<128x384xbf16, #tpu.memory_space<vmem>>, vector<128x384xbf16>
    %c0_5 = arith.constant 0 : index
    %c0_6 = arith.constant 0 : index
    %3 = vector.load %arg8[%c0_5, %c0_6] : memref<128x384xbf16, #tpu.memory_space<vmem>>, vector<128x384xbf16>
    %c0_7 = arith.constant 0 : index
    %c0_8 = arith.constant 0 : index
    %4 = vector.load %arg10[%c0_7, %c0_8] : memref<128x128xbf16, #tpu.memory_space<vmem>>, vector<128x128xbf16>
    %c0_9 = arith.constant 0 : index
    %c0_10 = arith.constant 0 : index
    %5 = vector.load %arg3[%c0_9, %c0_10] : memref<1x128xf32, #tpu.memory_space<vmem>>, vector<1x128xf32>
    %6 = vector.shape_cast %5 : vector<1x128xf32> to vector<1x128xf32>
    %7 = vector.broadcast %6 : vector<1x128xf32> to vector<16x128xf32>
    %c0_11 = arith.constant 0 : index
    %c0_12 = arith.constant 0 : index
    %8 = vector.load %arg5[%c0_11, %c0_12] : memref<1x128xf32, #tpu.memory_space<vmem>>, vector<1x128xf32>
    %9 = vector.shape_cast %8 : vector<1x128xf32> to vector<1x128xf32>
    %10 = vector.broadcast %9 : vector<1x128xf32> to vector<16x128xf32>
    %c0_13 = arith.constant 0 : index
    %c0_14 = arith.constant 0 : index
    %11 = vector.load %arg7[%c0_13, %c0_14] : memref<1x384xf32, #tpu.memory_space<vmem>>, vector<1x384xf32>
    %12 = vector.shape_cast %11 : vector<1x384xf32> to vector<1x384xf32>
    %13 = vector.broadcast %12 : vector<1x384xf32> to vector<16x384xf32>
    %c0_15 = arith.constant 0 : index
    %c0_16 = arith.constant 0 : index
    %14 = vector.load %arg9[%c0_15, %c0_16] : memref<1x128xf32, #tpu.memory_space<vmem>>, vector<1x128xf32>
    %15 = vector.shape_cast %14 : vector<1x128xf32> to vector<1x128xf32>
    %16 = vector.broadcast %15 : vector<1x128xf32> to vector<16x128xf32>
    %c0_17 = arith.constant 0 : index
    %c0_18 = arith.constant 0 : index
    %17 = vector.load %arg11[%c0_17, %c0_18] : memref<1x128xf32, #tpu.memory_space<vmem>>, vector<1x128xf32>
    %18 = vector.shape_cast %17 : vector<1x128xf32> to vector<1x128xf32>
    %19 = vector.broadcast %18 : vector<1x128xf32> to vector<16x128xf32>
    %c0_19 = arith.constant 0 : index
    %c0_20 = arith.constant 0 : index
    %20 = vector.load %arg1[%c0_19, %c0_20] : memref<16x128xbf16, #tpu.memory_space<vmem>>, vector<16x128xbf16>
    %cst = arith.constant dense<0.000000e+00> : vector<16x128xf32>
    %21 = tpu.matmul %20, %0, %cst {dimension_numbers = #tpu.dot_dimension_numbers<[1], [0], [0], [1], [0, 0, 1, 1], [], []>} : vector<16x128xbf16>, vector<128x128xbf16>, vector<16x128xf32> -> vector<16x128xf32>
    %22 = arith.addf %21, %7 : vector<16x128xf32>
    %cst_21 = arith.constant 0.000000e+00 : f32
    %23 = vector.broadcast %cst_21 : f32 to vector<16x128xf32>
    %24 = arith.maximumf %22, %23 : vector<16x128xf32>
    %25 = arith.truncf %24 : vector<16x128xf32> to vector<16x128xbf16>
    %cst_22 = arith.constant dense<0.000000e+00> : vector<16x128xf32>
    %26 = tpu.matmul %25, %1, %cst_22 {dimension_numbers = #tpu.dot_dimension_numbers<[1], [0], [0], [1], [0, 0, 1, 1], [], []>} : vector<16x128xbf16>, vector<128x128xbf16>, vector<16x128xf32> -> vector<16x128xf32>
    %27 = arith.addf %26, %10 : vector<16x128xf32>
    %cst_23 = arith.constant 0.000000e+00 : f32
    %28 = vector.broadcast %cst_23 : f32 to vector<16x128xf32>
    %29 = arith.maximumf %27, %28 : vector<16x128xf32>
    %c0_i32 = arith.constant 0 : i32
    %30 = arith.truncf %29 : vector<16x128xf32> to vector<16x128xbf16>
    %cst_24 = arith.constant dense<0.000000e+00> : vector<16x384xf32>
    %31 = tpu.matmul %30, %2, %cst_24 {dimension_numbers = #tpu.dot_dimension_numbers<[1], [0], [0], [1], [0, 0, 1, 1], [], []>} : vector<16x128xbf16>, vector<128x384xbf16>, vector<16x384xf32> -> vector<16x384xf32>
    %32 = arith.addf %31, %13 : vector<16x384xf32>
    %33 = arith.truncf %24 : vector<16x128xf32> to vector<16x128xbf16>
    %cst_25 = arith.constant dense<0.000000e+00> : vector<16x384xf32>
    %34 = tpu.matmul %33, %3, %cst_25 {dimension_numbers = #tpu.dot_dimension_numbers<[1], [0], [0], [1], [0, 0, 1, 1], [], []>} : vector<16x128xbf16>, vector<128x384xbf16>, vector<16x384xf32> -> vector<16x384xf32>
    %35 = vector.extract_strided_slice %32 {offsets = [0, 0], sizes = [16, 128], strides = [1, 1]} : vector<16x384xf32> to vector<16x128xf32>
    %36 = vector.extract_strided_slice %34 {offsets = [0, 0], sizes = [16, 128], strides = [1, 1]} : vector<16x384xf32> to vector<16x128xf32>
    %37 = arith.addf %35, %36 : vector<16x128xf32>
    %38 = arith.negf %37 : vector<16x128xf32>
    %39 = math.exp %38 : vector<16x128xf32>
    %cst_26 = arith.constant 1.000000e+00 : f32
    %40 = vector.broadcast %cst_26 : f32 to vector<16x128xf32>
    %41 = arith.addf %40, %39 : vector<16x128xf32>
    %42 = arith.divf %40, %41 : vector<16x128xf32>
    %43 = vector.extract_strided_slice %32 {offsets = [0, 128], sizes = [16, 128], strides = [1, 1]} : vector<16x384xf32> to vector<16x128xf32>
    %44 = vector.extract_strided_slice %34 {offsets = [0, 128], sizes = [16, 128], strides = [1, 1]} : vector<16x384xf32> to vector<16x128xf32>
    %45 = arith.addf %43, %44 : vector<16x128xf32>
    %46 = arith.negf %45 : vector<16x128xf32>
    %47 = math.exp %46 : vector<16x128xf32>
    %cst_27 = arith.constant 1.000000e+00 : f32
    %48 = vector.broadcast %cst_27 : f32 to vector<16x128xf32>
    %49 = arith.addf %48, %47 : vector<16x128xf32>
    %50 = arith.divf %48, %49 : vector<16x128xf32>
    %51 = vector.extract_strided_slice %32 {offsets = [0, 256], sizes = [16, 128], strides = [1, 1]} : vector<16x384xf32> to vector<16x128xf32>
    %52 = vector.extract_strided_slice %34 {offsets = [0, 256], sizes = [16, 128], strides = [1, 1]} : vector<16x384xf32> to vector<16x128xf32>
    %53 = arith.addf %52, %16 : vector<16x128xf32>
    %54 = arith.mulf %42, %53 : vector<16x128xf32>
    %55 = arith.addf %51, %54 : vector<16x128xf32>
    %56 = math.tanh %55 : vector<16x128xf32>
    %57 = arith.subf %24, %56 : vector<16x128xf32>
    %58 = arith.mulf %50, %57 : vector<16x128xf32>
    %59 = arith.addf %56, %58 : vector<16x128xf32>
    %60 = arith.truncf %59 : vector<16x128xf32> to vector<16x128xbf16>
    %cst_28 = arith.constant dense<0.000000e+00> : vector<16x128xf32>
    %61 = tpu.matmul %60, %4, %cst_28 {dimension_numbers = #tpu.dot_dimension_numbers<[1], [0], [0], [1], [0, 0, 1, 1], [], []>} : vector<16x128xbf16>, vector<128x128xbf16>, vector<16x128xf32> -> vector<16x128xf32>
    %62 = arith.addf %61, %19 : vector<16x128xf32>
    %63 = vector.extract_strided_slice %62 {offsets = [0, 0], sizes = [16, 8], strides = [1, 1]} : vector<16x128xf32> to vector<16x8xf32>
    %64 = arith.index_cast %c0_i32 : i32 to index
    %c0_29 = arith.constant 0 : index
    %c0_30 = arith.constant 0 : index
    %65 = vector.load %arg12[%64, %c0_29, %c0_30] : memref<4x16x8xf32, #tpu.memory_space<vmem>>, vector<1x16x8xf32>
    %66 = vector.shape_cast %65 : vector<1x16x8xf32> to vector<16x8xf32>
    %67 = vector.shape_cast %63 : vector<16x8xf32> to vector<1x16x8xf32>
    tpu.vector_store %arg12[%64, %c0_29, %c0_30], %67 {strides = array<i32>} : memref<4x16x8xf32, #tpu.memory_space<vmem>>, vector<1x16x8xf32>,
    %68 = arith.truncf %59 : vector<16x128xf32> to vector<16x128xbf16>
    %cst_31 = arith.constant dense<0.000000e+00> : vector<16x128xf32>
    %69 = tpu.matmul %68, %1, %cst_31 {dimension_numbers = #tpu.dot_dimension_numbers<[1], [0], [0], [1], [0, 0, 1, 1], [], []>} : vector<16x128xbf16>, vector<128x128xbf16>, vector<16x128xf32> -> vector<16x128xf32>
    %70 = arith.addf %69, %10 : vector<16x128xf32>
    %cst_32 = arith.constant 0.000000e+00 : f32
    %71 = vector.broadcast %cst_32 : f32 to vector<16x128xf32>
    %72 = arith.maximumf %70, %71 : vector<16x128xf32>
    %c1_i32 = arith.constant 1 : i32
    %73 = arith.truncf %72 : vector<16x128xf32> to vector<16x128xbf16>
    %cst_33 = arith.constant dense<0.000000e+00> : vector<16x384xf32>
    %74 = tpu.matmul %73, %2, %cst_33 {dimension_numbers = #tpu.dot_dimension_numbers<[1], [0], [0], [1], [0, 0, 1, 1], [], []>} : vector<16x128xbf16>, vector<128x384xbf16>, vector<16x384xf32> -> vector<16x384xf32>
    %75 = arith.addf %74, %13 : vector<16x384xf32>
    %76 = arith.truncf %59 : vector<16x128xf32> to vector<16x128xbf16>
    %cst_34 = arith.constant dense<0.000000e+00> : vector<16x384xf32>
    %77 = tpu.matmul %76, %3, %cst_34 {dimension_numbers = #tpu.dot_dimension_numbers<[1], [0], [0], [1], [0, 0, 1, 1], [], []>} : vector<16x128xbf16>, vector<128x384xbf16>, vector<16x384xf32> -> vector<16x384xf32>
    %78 = vector.extract_strided_slice %75 {offsets = [0, 0], sizes = [16, 128], strides = [1, 1]} : vector<16x384xf32> to vector<16x128xf32>
    %79 = vector.extract_strided_slice %77 {offsets = [0, 0], sizes = [16, 128], strides = [1, 1]} : vector<16x384xf32> to vector<16x128xf32>
    %80 = arith.addf %78, %79 : vector<16x128xf32>
    %81 = arith.negf %80 : vector<16x128xf32>
    %82 = math.exp %81 : vector<16x128xf32>
    %cst_35 = arith.constant 1.000000e+00 : f32
    %83 = vector.broadcast %cst_35 : f32 to vector<16x128xf32>
    %84 = arith.addf %83, %82 : vector<16x128xf32>
    %85 = arith.divf %83, %84 : vector<16x128xf32>
    %86 = vector.extract_strided_slice %75 {offsets = [0, 128], sizes = [16, 128], strides = [1, 1]} : vector<16x384xf32> to vector<16x128xf32>
    %87 = vector.extract_strided_slice %77 {offsets = [0, 128], sizes = [16, 128], strides = [1, 1]} : vector<16x384xf32> to vector<16x128xf32>
    %88 = arith.addf %86, %87 : vector<16x128xf32>
    %89 = arith.negf %88 : vector<16x128xf32>
    %90 = math.exp %89 : vector<16x128xf32>
    %cst_36 = arith.constant 1.000000e+00 : f32
    %91 = vector.broadcast %cst_36 : f32 to vector<16x128xf32>
    %92 = arith.addf %91, %90 : vector<16x128xf32>
    %93 = arith.divf %91, %92 : vector<16x128xf32>
    %94 = vector.extract_strided_slice %75 {offsets = [0, 256], sizes = [16, 128], strides = [1, 1]} : vector<16x384xf32> to vector<16x128xf32>
    %95 = vector.extract_strided_slice %77 {offsets = [0, 256], sizes = [16, 128], strides = [1, 1]} : vector<16x384xf32> to vector<16x128xf32>
    %96 = arith.addf %95, %16 : vector<16x128xf32>
    %97 = arith.mulf %85, %96 : vector<16x128xf32>
    %98 = arith.addf %94, %97 : vector<16x128xf32>
    %99 = math.tanh %98 : vector<16x128xf32>
    %100 = arith.subf %59, %99 : vector<16x128xf32>
    %101 = arith.mulf %93, %100 : vector<16x128xf32>
    %102 = arith.addf %99, %101 : vector<16x128xf32>
    %103 = arith.truncf %102 : vector<16x128xf32> to vector<16x128xbf16>
    %cst_37 = arith.constant dense<0.000000e+00> : vector<16x128xf32>
    %104 = tpu.matmul %103, %4, %cst_37 {dimension_numbers = #tpu.dot_dimension_numbers<[1], [0], [0], [1], [0, 0, 1, 1], [], []>} : vector<16x128xbf16>, vector<128x128xbf16>, vector<16x128xf32> -> vector<16x128xf32>
    %105 = arith.addf %104, %19 : vector<16x128xf32>
    %106 = vector.extract_strided_slice %105 {offsets = [0, 0], sizes = [16, 8], strides = [1, 1]} : vector<16x128xf32> to vector<16x8xf32>
    %107 = arith.index_cast %c1_i32 : i32 to index
    %c0_38 = arith.constant 0 : index
    %c0_39 = arith.constant 0 : index
    %108 = vector.load %arg12[%107, %c0_38, %c0_39] : memref<4x16x8xf32, #tpu.memory_space<vmem>>, vector<1x16x8xf32>
    %109 = vector.shape_cast %108 : vector<1x16x8xf32> to vector<16x8xf32>
    %110 = vector.shape_cast %106 : vector<16x8xf32> to vector<1x16x8xf32>
    tpu.vector_store %arg12[%107, %c0_38, %c0_39], %110 {strides = array<i32>} : memref<4x16x8xf32, #tpu.memory_space<vmem>>, vector<1x16x8xf32>,
    %111 = arith.truncf %102 : vector<16x128xf32> to vector<16x128xbf16>
    %cst_40 = arith.constant dense<0.000000e+00> : vector<16x128xf32>
    %112 = tpu.matmul %111, %1, %cst_40 {dimension_numbers = #tpu.dot_dimension_numbers<[1], [0], [0], [1], [0, 0, 1, 1], [], []>} : vector<16x128xbf16>, vector<128x128xbf16>, vector<16x128xf32> -> vector<16x128xf32>
    %113 = arith.addf %112, %10 : vector<16x128xf32>
    %cst_41 = arith.constant 0.000000e+00 : f32
    %114 = vector.broadcast %cst_41 : f32 to vector<16x128xf32>
    %115 = arith.maximumf %113, %114 : vector<16x128xf32>
    %c2_i32 = arith.constant 2 : i32
    %116 = arith.truncf %115 : vector<16x128xf32> to vector<16x128xbf16>
    %cst_42 = arith.constant dense<0.000000e+00> : vector<16x384xf32>
    %117 = tpu.matmul %116, %2, %cst_42 {dimension_numbers = #tpu.dot_dimension_numbers<[1], [0], [0], [1], [0, 0, 1, 1], [], []>} : vector<16x128xbf16>, vector<128x384xbf16>, vector<16x384xf32> -> vector<16x384xf32>
    %118 = arith.addf %117, %13 : vector<16x384xf32>
    %119 = arith.truncf %102 : vector<16x128xf32> to vector<16x128xbf16>
    %cst_43 = arith.constant dense<0.000000e+00> : vector<16x384xf32>
    %120 = tpu.matmul %119, %3, %cst_43 {dimension_numbers = #tpu.dot_dimension_numbers<[1], [0], [0], [1], [0, 0, 1, 1], [], []>} : vector<16x128xbf16>, vector<128x384xbf16>, vector<16x384xf32> -> vector<16x384xf32>
    %121 = vector.extract_strided_slice %118 {offsets = [0, 0], sizes = [16, 128], strides = [1, 1]} : vector<16x384xf32> to vector<16x128xf32>
    %122 = vector.extract_strided_slice %120 {offsets = [0, 0], sizes = [16, 128], strides = [1, 1]} : vector<16x384xf32> to vector<16x128xf32>
    %123 = arith.addf %121, %122 : vector<16x128xf32>
    %124 = arith.negf %123 : vector<16x128xf32>
    %125 = math.exp %124 : vector<16x128xf32>
    %cst_44 = arith.constant 1.000000e+00 : f32
    %126 = vector.broadcast %cst_44 : f32 to vector<16x128xf32>
    %127 = arith.addf %126, %125 : vector<16x128xf32>
    %128 = arith.divf %126, %127 : vector<16x128xf32>
    %129 = vector.extract_strided_slice %118 {offsets = [0, 128], sizes = [16, 128], strides = [1, 1]} : vector<16x384xf32> to vector<16x128xf32>
    %130 = vector.extract_strided_slice %120 {offsets = [0, 128], sizes = [16, 128], strides = [1, 1]} : vector<16x384xf32> to vector<16x128xf32>
    %131 = arith.addf %129, %130 : vector<16x128xf32>
    %132 = arith.negf %131 : vector<16x128xf32>
    %133 = math.exp %132 : vector<16x128xf32>
    %cst_45 = arith.constant 1.000000e+00 : f32
    %134 = vector.broadcast %cst_45 : f32 to vector<16x128xf32>
    %135 = arith.addf %134, %133 : vector<16x128xf32>
    %136 = arith.divf %134, %135 : vector<16x128xf32>
    %137 = vector.extract_strided_slice %118 {offsets = [0, 256], sizes = [16, 128], strides = [1, 1]} : vector<16x384xf32> to vector<16x128xf32>
    %138 = vector.extract_strided_slice %120 {offsets = [0, 256], sizes = [16, 128], strides = [1, 1]} : vector<16x384xf32> to vector<16x128xf32>
    %139 = arith.addf %138, %16 : vector<16x128xf32>
    %140 = arith.mulf %128, %139 : vector<16x128xf32>
    %141 = arith.addf %137, %140 : vector<16x128xf32>
    %142 = math.tanh %141 : vector<16x128xf32>
    %143 = arith.subf %102, %142 : vector<16x128xf32>
    %144 = arith.mulf %136, %143 : vector<16x128xf32>
    %145 = arith.addf %142, %144 : vector<16x128xf32>
    %146 = arith.truncf %145 : vector<16x128xf32> to vector<16x128xbf16>
    %cst_46 = arith.constant dense<0.000000e+00> : vector<16x128xf32>
    %147 = tpu.matmul %146, %4, %cst_46 {dimension_numbers = #tpu.dot_dimension_numbers<[1], [0], [0], [1], [0, 0, 1, 1], [], []>} : vector<16x128xbf16>, vector<128x128xbf16>, vector<16x128xf32> -> vector<16x128xf32>
    %148 = arith.addf %147, %19 : vector<16x128xf32>
    %149 = vector.extract_strided_slice %148 {offsets = [0, 0], sizes = [16, 8], strides = [1, 1]} : vector<16x128xf32> to vector<16x8xf32>
    %150 = arith.index_cast %c2_i32 : i32 to index
    %c0_47 = arith.constant 0 : index
    %c0_48 = arith.constant 0 : index
    %151 = vector.load %arg12[%150, %c0_47, %c0_48] : memref<4x16x8xf32, #tpu.memory_space<vmem>>, vector<1x16x8xf32>
    %152 = vector.shape_cast %151 : vector<1x16x8xf32> to vector<16x8xf32>
    %153 = vector.shape_cast %149 : vector<16x8xf32> to vector<1x16x8xf32>
    tpu.vector_store %arg12[%150, %c0_47, %c0_48], %153 {strides = array<i32>} : memref<4x16x8xf32, #tpu.memory_space<vmem>>, vector<1x16x8xf32>,
    %154 = arith.truncf %145 : vector<16x128xf32> to vector<16x128xbf16>
    %cst_49 = arith.constant dense<0.000000e+00> : vector<16x128xf32>
    %155 = tpu.matmul %154, %1, %cst_49 {dimension_numbers = #tpu.dot_dimension_numbers<[1], [0], [0], [1], [0, 0, 1, 1], [], []>} : vector<16x128xbf16>, vector<128x128xbf16>, vector<16x128xf32> -> vector<16x128xf32>
    %156 = arith.addf %155, %10 : vector<16x128xf32>
    %cst_50 = arith.constant 0.000000e+00 : f32
    %157 = vector.broadcast %cst_50 : f32 to vector<16x128xf32>
    %158 = arith.maximumf %156, %157 : vector<16x128xf32>
    %c3_i32 = arith.constant 3 : i32
    %159 = arith.truncf %158 : vector<16x128xf32> to vector<16x128xbf16>
    %cst_51 = arith.constant dense<0.000000e+00> : vector<16x384xf32>
    %160 = tpu.matmul %159, %2, %cst_51 {dimension_numbers = #tpu.dot_dimension_numbers<[1], [0], [0], [1], [0, 0, 1, 1], [], []>} : vector<16x128xbf16>, vector<128x384xbf16>, vector<16x384xf32> -> vector<16x384xf32>
    %161 = arith.addf %160, %13 : vector<16x384xf32>
    %162 = arith.truncf %145 : vector<16x128xf32> to vector<16x128xbf16>
    %cst_52 = arith.constant dense<0.000000e+00> : vector<16x384xf32>
    %163 = tpu.matmul %162, %3, %cst_52 {dimension_numbers = #tpu.dot_dimension_numbers<[1], [0], [0], [1], [0, 0, 1, 1], [], []>} : vector<16x128xbf16>, vector<128x384xbf16>, vector<16x384xf32> -> vector<16x384xf32>
    %164 = vector.extract_strided_slice %161 {offsets = [0, 0], sizes = [16, 128], strides = [1, 1]} : vector<16x384xf32> to vector<16x128xf32>
    %165 = vector.extract_strided_slice %163 {offsets = [0, 0], sizes = [16, 128], strides = [1, 1]} : vector<16x384xf32> to vector<16x128xf32>
    %166 = arith.addf %164, %165 : vector<16x128xf32>
    %167 = arith.negf %166 : vector<16x128xf32>
    %168 = math.exp %167 : vector<16x128xf32>
    %cst_53 = arith.constant 1.000000e+00 : f32
    %169 = vector.broadcast %cst_53 : f32 to vector<16x128xf32>
    %170 = arith.addf %169, %168 : vector<16x128xf32>
    %171 = arith.divf %169, %170 : vector<16x128xf32>
    %172 = vector.extract_strided_slice %161 {offsets = [0, 128], sizes = [16, 128], strides = [1, 1]} : vector<16x384xf32> to vector<16x128xf32>
    %173 = vector.extract_strided_slice %163 {offsets = [0, 128], sizes = [16, 128], strides = [1, 1]} : vector<16x384xf32> to vector<16x128xf32>
    %174 = arith.addf %172, %173 : vector<16x128xf32>
    %175 = arith.negf %174 : vector<16x128xf32>
    %176 = math.exp %175 : vector<16x128xf32>
    %cst_54 = arith.constant 1.000000e+00 : f32
    %177 = vector.broadcast %cst_54 : f32 to vector<16x128xf32>
    %178 = arith.addf %177, %176 : vector<16x128xf32>
    %179 = arith.divf %177, %178 : vector<16x128xf32>
    %180 = vector.extract_strided_slice %161 {offsets = [0, 256], sizes = [16, 128], strides = [1, 1]} : vector<16x384xf32> to vector<16x128xf32>
    %181 = vector.extract_strided_slice %163 {offsets = [0, 256], sizes = [16, 128], strides = [1, 1]} : vector<16x384xf32> to vector<16x128xf32>
    %182 = arith.addf %181, %16 : vector<16x128xf32>
    %183 = arith.mulf %171, %182 : vector<16x128xf32>
    %184 = arith.addf %180, %183 : vector<16x128xf32>
    %185 = math.tanh %184 : vector<16x128xf32>
    %186 = arith.subf %145, %185 : vector<16x128xf32>
    %187 = arith.mulf %179, %186 : vector<16x128xf32>
    %188 = arith.addf %185, %187 : vector<16x128xf32>
    %189 = arith.truncf %188 : vector<16x128xf32> to vector<16x128xbf16>
    %cst_55 = arith.constant dense<0.000000e+00> : vector<16x128xf32>
    %190 = tpu.matmul %189, %4, %cst_55 {dimension_numbers = #tpu.dot_dimension_numbers<[1], [0], [0], [1], [0, 0, 1, 1], [], []>} : vector<16x128xbf16>, vector<128x128xbf16>, vector<16x128xf32> -> vector<16x128xf32>
    %191 = arith.addf %190, %19 : vector<16x128xf32>
    %192 = vector.extract_strided_slice %191 {offsets = [0, 0], sizes = [16, 8], strides = [1, 1]} : vector<16x128xf32> to vector<16x8xf32>
    %193 = arith.index_cast %c3_i32 : i32 to index
    %c0_56 = arith.constant 0 : index
    %c0_57 = arith.constant 0 : index
    %194 = vector.load %arg12[%193, %c0_56, %c0_57] : memref<4x16x8xf32, #tpu.memory_space<vmem>>, vector<1x16x8xf32>
    %195 = vector.shape_cast %194 : vector<1x16x8xf32> to vector<16x8xf32>
    %196 = vector.shape_cast %192 : vector<16x8xf32> to vector<1x16x8xf32>
    tpu.vector_store %arg12[%193, %c0_56, %c0_57], %196 {strides = array<i32>} : memref<4x16x8xf32, #tpu.memory_space<vmem>>, vector<1x16x8xf32>,
    %197 = arith.truncf %188 : vector<16x128xf32> to vector<16x128xbf16>
    %cst_58 = arith.constant dense<0.000000e+00> : vector<16x128xf32>
    %198 = tpu.matmul %197, %1, %cst_58 {dimension_numbers = #tpu.dot_dimension_numbers<[1], [0], [0], [1], [0, 0, 1, 1], [], []>} : vector<16x128xbf16>, vector<128x128xbf16>, vector<16x128xf32> -> vector<16x128xf32>
    %199 = arith.addf %198, %10 : vector<16x128xf32>
    %cst_59 = arith.constant 0.000000e+00 : f32
    %200 = vector.broadcast %cst_59 : f32 to vector<16x128xf32>
    %201 = arith.maximumf %199, %200 : vector<16x128xf32>
    %c4_i32 = arith.constant 4 : i32
    return
  }
  func.func @transform_0(%arg0: i32) -> (i32, i32) {
    %c0_i32 = arith.constant 0 : i32
    %c0_i32_0 = arith.constant 0 : i32
    return %arg0, %c0_i32 : i32, i32
  }
  func.func @transform_1(%arg0: i32) -> (i32, i32) {
    %c0_i32 = arith.constant 0 : i32
    %c0_i32_0 = arith.constant 0 : i32
    %c0_i32_1 = arith.constant 0 : i32
    return %c0_i32, %c0_i32_0 : i32, i32
  }
  func.func @transform_2(%arg0: i32) -> (i32, i32) {
    %c0_i32 = arith.constant 0 : i32
    %c0_i32_0 = arith.constant 0 : i32
    %c0_i32_1 = arith.constant 0 : i32
    return %c0_i32, %c0_i32_0 : i32, i32
  }
  func.func @transform_3(%arg0: i32) -> (i32, i32) {
    %c0_i32 = arith.constant 0 : i32
    %c0_i32_0 = arith.constant 0 : i32
    %c0_i32_1 = arith.constant 0 : i32
    return %c0_i32, %c0_i32_0 : i32, i32
  }
  func.func @transform_4(%arg0: i32) -> (i32, i32) {
    %c0_i32 = arith.constant 0 : i32
    %c0_i32_0 = arith.constant 0 : i32
    %c0_i32_1 = arith.constant 0 : i32
    return %c0_i32, %c0_i32_0 : i32, i32
  }
  func.func @transform_5(%arg0: i32) -> (i32, i32) {
    %c0_i32 = arith.constant 0 : i32
    %c0_i32_0 = arith.constant 0 : i32
    %c0_i32_1 = arith.constant 0 : i32
    return %c0_i32, %c0_i32_0 : i32, i32
  }
  func.func @transform_6(%arg0: i32) -> (i32, i32) {
    %c0_i32 = arith.constant 0 : i32
    %c0_i32_0 = arith.constant 0 : i32
    %c0_i32_1 = arith.constant 0 : i32
    return %c0_i32, %c0_i32_0 : i32, i32
  }
  func.func @transform_7(%arg0: i32) -> (i32, i32) {
    %c0_i32 = arith.constant 0 : i32
    %c0_i32_0 = arith.constant 0 : i32
    %c0_i32_1 = arith.constant 0 : i32
    return %c0_i32, %c0_i32_0 : i32, i32
  }
  func.func @transform_8(%arg0: i32) -> (i32, i32) {
    %c0_i32 = arith.constant 0 : i32
    %c0_i32_0 = arith.constant 0 : i32
    %c0_i32_1 = arith.constant 0 : i32
    return %c0_i32, %c0_i32_0 : i32, i32
  }
  func.func @transform_9(%arg0: i32) -> (i32, i32) {
    %c0_i32 = arith.constant 0 : i32
    %c0_i32_0 = arith.constant 0 : i32
    %c0_i32_1 = arith.constant 0 : i32
    return %c0_i32, %c0_i32_0 : i32, i32
  }
  func.func @transform_10(%arg0: i32) -> (i32, i32) {
    %c0_i32 = arith.constant 0 : i32
    %c0_i32_0 = arith.constant 0 : i32
    %c0_i32_1 = arith.constant 0 : i32
    return %c0_i32, %c0_i32_0 : i32, i32
  }
  func.func @transform_11(%arg0: i32) -> (i32, i32, i32) {
    %c0_i32 = arith.constant 0 : i32
    %c0_i32_0 = arith.constant 0 : i32
    %c0_i32_1 = arith.constant 0 : i32
    return %c0_i32, %arg0, %c0_i32_0 : i32, i32, i32
  }
}

</mosaic_0001>

<bundles_post_ra>
// kernel: tpu_custom_call.1
= control target key start
LH: loop header
LB: loop body
LE: loop exit
PB: predicated region body
PF: predicated region fallthrough
CT: control target
= control target key end

     0   :  { %16 = vsyncpa [#allocation3], 0  ;;  %s3798_s0 = inlined_call_operand.hbm [shape: bf16[16,128], index: 0, kind: input, shape index: {}]   ;;  %s3799_s1 = inlined_call_operand.hbm [shape: bf16[128,128], index: 1, kind: input, shape index: {}]   ;;  %s3800_s2 = inlined_call_operand.vmem [shape: f32[1,128], index: 2, kind: input, shape index: {}]   ;;  %s3801_s3 = inlined_call_operand.hbm [shape: bf16[128,128], index: 3, kind: input, shape index: {}]   ;;  %s3802_s4 = inlined_call_operand.vmem [shape: f32[1,128], index: 4, kind: input, shape index: {}]   ;;  %s3803_s5 = inlined_call_operand.hbm [shape: bf16[128,384], index: 5, kind: input, shape index: {}]   ;;  %s3804_s6 = inlined_call_operand.vmem [shape: f32[1,384], index: 6, kind: input, shape index: {}]   ;;  %s3805_s7 = inlined_call_operand.hbm [shape: bf16[128,384], index: 7, kind: input, shape index: {}]   ;;  %s3806_s8 = inlined_call_operand.vmem [shape: f32[1,128], index: 8, kind: input, shape index: {}]   ;;  %s3807_s9 = inlined_call_operand.hbm [shape: bf16[128,128], index: 9, kind: input, shape index: {}]   ;;  %s3808_s10 = inlined_call_operand.vmem [shape: f32[1,128], index: 10, kind: input, shape index: {}]   ;;  %s3809_s11 = inlined_call_operand.vmem [shape: f32[4,16,8], index: 11, kind: output, shape index: {}]  }
   0x1   :  { %17 = vsyncpa [#allocation5], 0 }
   0x2   :  { %18 = vsyncpa [#allocation8], 0 }
   0x3   :  { %19 = vsyncpa [#allocation11], 0  ;;  %s2946_s17 = smov [#allocation4]   ;;  %s2947_s19 = smov [#allocation7]  }
   0x4   :  { %s37_s18 = sshll.u32 %s2946_s17, 4  ;;  %s65_s20 = sshll.u32 %s2947_s19, 4  ;;  %s38_s18 = int_to_ptr.vmem [resolvable:$true] %s37_s18  ;;  %s3019_s20 = int_to_ptr.vmem [resolvable:$true] %s65_s20 }
   0x5   :  { %s2806_s23 = scalar_lea.hbm %s3799_s1, 1024 }
   0x6   :  { %p2807_p0 = scmp.ne.s32.totalorder %s3799_s1, %s2806_s23  ;;  %p2810_p1 = scmp.lt.u32.totalorder %s2806_s23, %s3799_s1 }
   0x8   :  { %p2812_p2 = pnand %p2810_p1, %p2807_p0 }
   0xa   :  { %2815 = shalt.err (!%p2812_p2)
}
   0xb   :  { %s2816_s28 = scalar_lea.vmem %s38_s18, 1024  ;;  %p2821_p4 = scmp.lt.s32.totalorder %s38_s18, %s38_s18 }
   0xc   :  { %p2817_p3 = scmp.ne.s32.totalorder %s38_s18, %s2816_s28  ;;  %p2822_p5 = scmp.lt.s32.totalorder %s2816_s28, %s2816_s28 }
   0xe   :  { %p2823_p6 = por %p2822_p5, %p2821_p4 }
  0x10   :  { %p2824_p7 = pnand %p2823_p6, %p2817_p3 }
  0x12   :  { %2827 = shalt.err (!%p2824_p7)
}
  0x13   :  { %s2948_s29 = smov 64   ;;  %s2949_s30 = smov 4  }
  0x14   :  { %43 = dma.hbm_to_vmem [thread:$0]  %s3799_s1, 1024, %s38_s18, [#allocation5], %s2948_s29, %s2948_s29, %s2949_s30  }
  0x15   :  { %s2828_s16 = scalar_lea.hbm %s3803_s5, 3072 }
  0x16   :  { %p2829_p8 = scmp.ne.s32.totalorder %s3803_s5, %s2828_s16  ;;  %p2832_p9 = scmp.lt.u32.totalorder %s2828_s16, %s3803_s5 }
  0x18   :  { %p2834_p10 = pnand %p2832_p9, %p2829_p8 }
  0x1a   :  { %2837 = shalt.err (!%p2834_p10)
}
  0x1b   :  { %s2838_s23 = scalar_lea.vmem %s3019_s20, 3072  ;;  %p2843_p12 = scmp.lt.s32.totalorder %s3019_s20, %s3019_s20 }
  0x1c   :  { %p2839_p11 = scmp.ne.s32.totalorder %s3019_s20, %s2838_s23  ;;  %p2844_p13 = scmp.lt.s32.totalorder %s2838_s23, %s2838_s23 }
  0x1e   :  { %p2845_p0 = por %p2844_p13, %p2843_p12 }
  0x20   :  { %p2846_p1 = pnand %p2845_p0, %p2839_p11 }
  0x22   :  { %2849 = shalt.err (!%p2846_p1)
}
  0x23   :  { %s2950_s1 = smov 192   ;;  %s2951_s18 = smov 12  }
  0x24   :  { %71 = dma.hbm_to_vmem [thread:$0]  %s3803_s5, 3072, %s3019_s20, [#allocation8], %s2950_s1, %s2950_s1, %s2951_s18  }
  0x25   :  { %s2952_s26 = smov [#allocation2]   ;;  %s2953_s28 = smov [#allocation6]  }
  0x26   :  { %s25_s27 = sshll.u32 %s2952_s26, 4  ;;  %s51_s12 = sshll.u32 %s2953_s28, 4  ;;  %s26_s27 = int_to_ptr.vmem [resolvable:$true] %s25_s27  ;;  %s3056_s12 = int_to_ptr.vmem [resolvable:$true] %s51_s12 }
  0x27   :  { %s2850_s15 = scalar_lea.hbm %s3798_s0, 128 }
  0x28   :  { %p2851_p2 = scmp.ne.s32.totalorder %s3798_s0, %s2850_s15  ;;  %p2854_p3 = scmp.lt.u32.totalorder %s2850_s15, %s3798_s0 }
  0x2a   :  { %p2856_p4 = pnand %p2854_p3, %p2851_p2 }
  0x2c   :  { %2859 = shalt.err (!%p2856_p4)
}
  0x2d   :  { %s2860_s5 = scalar_lea.vmem %s26_s27, 128  ;;  %p2865_p6 = scmp.lt.s32.totalorder %s26_s27, %s26_s27 }
  0x2e   :  { %p2861_p5 = scmp.ne.s32.totalorder %s26_s27, %s2860_s5  ;;  %p2866_p7 = scmp.lt.s32.totalorder %s2860_s5, %s2860_s5 }
  0x30   :  { %p2867_p8 = por %p2866_p7, %p2865_p6 }
  0x32   :  { %p2868_p9 = pnand %p2867_p8, %p2861_p5 }
  0x34   :  { %2871 = shalt.err (!%p2868_p9)
}
  0x35   :  { %31 = dma.hbm_to_vmem [thread:$0]  %s3798_s0, 128, %s26_s27, [#allocation3], %s2948_s29, %s2948_s29, %s2949_s30  }
  0x36   :  { %s2872_s25 = scalar_lea.hbm %s3801_s3, 1024 }
  0x37   :  { %p2873_p10 = scmp.ne.s32.totalorder %s3801_s3, %s2872_s25  ;;  %p2876_p11 = scmp.lt.u32.totalorder %s2872_s25, %s3801_s3 }
  0x39   :  { %p2878_p12 = pnand %p2876_p11, %p2873_p10 }
  0x3b   :  { %2881 = shalt.err (!%p2878_p12)
}
  0x3c   :  { %s2882_s15 = scalar_lea.vmem %s3056_s12, 1024  ;;  %p2887_p0 = scmp.lt.s32.totalorder %s3056_s12, %s3056_s12 }
  0x3d   :  { %p2883_p13 = scmp.ne.s32.totalorder %s3056_s12, %s2882_s15  ;;  %p2888_p1 = scmp.lt.s32.totalorder %s2882_s15, %s2882_s15 }
  0x3f   :  { %p2889_p2 = por %p2888_p1, %p2887_p0 }
  0x41   :  { %p2890_p3 = pnand %p2889_p2, %p2883_p13 }
  0x43   :  { %2893 = shalt.err (!%p2890_p3)
}
  0x44   :  { %57 = dma.hbm_to_vmem [thread:$0]  %s3801_s3, 1024, %s3056_s12, [#allocation5], %s2948_s29, %s2948_s29, %s2949_s30  }
  0x45   :  { %s2954_s16 = smov [#allocation9]   ;;  %s2955_s19 = smov [#allocation10]  }
  0x46   :  { %s79_s17 = sshll.u32 %s2954_s16, 4  ;;  %s93_s21 = sshll.u32 %s2955_s19, 4  ;;  %s80_s17 = int_to_ptr.vmem [resolvable:$true] %s79_s17  ;;  %s3093_s21 = int_to_ptr.vmem [resolvable:$true] %s93_s21 }
  0x47   :  { %s2894_s22 = scalar_lea.hbm %s3805_s7, 3072 }
  0x48   :  { %p2895_p4 = scmp.ne.s32.totalorder %s3805_s7, %s2894_s22  ;;  %p2898_p5 = scmp.lt.u32.totalorder %s2894_s22, %s3805_s7 }
  0x4a   :  { %p2900_p6 = pnand %p2898_p5, %p2895_p4 }
  0x4c   :  { %2903 = shalt.err (!%p2900_p6)
}
  0x4d   :  { %s2904_s3 = scalar_lea.vmem %s80_s17, 3072  ;;  %p2909_p8 = scmp.lt.s32.totalorder %s80_s17, %s80_s17 }
  0x4e   :  { %p2905_p7 = scmp.ne.s32.totalorder %s80_s17, %s2904_s3  ;;  %p2910_p9 = scmp.lt.s32.totalorder %s2904_s3, %s2904_s3 }
  0x50   :  { %p2911_p10 = por %p2910_p9, %p2909_p8 }
  0x52   :  { %p2912_p11 = pnand %p2911_p10, %p2905_p7 }
  0x54   :  { %2915 = shalt.err (!%p2912_p11)
}
  0x55   :  { %85 = dma.hbm_to_vmem [thread:$0]  %s3805_s7, 3072, %s80_s17, [#allocation8], %s2950_s1, %s2950_s1, %s2951_s18  }
  0x56   :  { %s2916_s15 = scalar_lea.hbm %s3807_s9, 1024 }
  0x57   :  { %p2917_p12 = scmp.ne.s32.totalorder %s3807_s9, %s2916_s15  ;;  %p2920_p13 = scmp.lt.u32.totalorder %s2916_s15, %s3807_s9 }
  0x59   :  { %p2922_p0 = pnand %p2920_p13, %p2917_p12 }
  0x5b   :  { %2925 = shalt.err (!%p2922_p0)
}
  0x5c   :  { %s2926_s5 = scalar_lea.vmem %s3093_s21, 1024  ;;  %p2931_p2 = scmp.lt.s32.totalorder %s3093_s21, %s3093_s21 }
  0x5d   :  { %p2927_p1 = scmp.ne.s32.totalorder %s3093_s21, %s2926_s5  ;;  %p2932_p3 = scmp.lt.s32.totalorder %s2926_s5, %s2926_s5 }
  0x5f   :  { %p2933_p4 = por %p2932_p3, %p2931_p2 }
  0x61   :  { %p2934_p5 = pnand %p2933_p4, %p2927_p1 }
  0x63   :  { %2937 = shalt.err (!%p2934_p5)
}
  0x64   :  { %99 = dma.hbm_to_vmem [thread:$0]  %s3807_s9, 1024, %s3093_s21, [#allocation11], %s2948_s29, %s2948_s29, %s2949_s30  }
  0x65   :  { %2938 = dma.done.wait [#allocation3], 128  }
  0x66   :  { %2939 = vsyncadd [#allocation3], 4294967168 }
  0x67   :  { %2940 = dma.done.wait [#allocation5], 2048  }
  0x68   :  { %2941 = vsyncadd [#allocation5], 4294965248 }
  0x69   :  { %2942 = dma.done.wait [#allocation8], 6144  }
  0x6a   :  { %2943 = vsyncadd [#allocation8], 4294961152 }
  0x6b   :  { %2944 = dma.done.wait [#allocation11], 1024  }
  0x6c   :  { %2945 = vsyncadd [#allocation11], 4294966272  ;;  %v3836_v0 = vmov 0.0   ;;  %vm2957_vm0 = vmmov 0   ;;  %v2571_v1 = vld [vmem:[#allocation4] sm:$0xff]   ;;  %v2572_v2 = vld [vmem:[#allocation4 + $0x8] sm:$0xff]  }
  0x6d   :  { %2186 = vmatprep.subr.bf16.mxu0 %v3836_v0  ;;  %2202 = vmatprep.mubr.msk.bf16.mxu0 %vm2957_vm0, %v3836_v0  ;;  %v2573_v3 = vld [vmem:[#allocation4 + $0x10] sm:$0xff]   ;;  %v3138_v4 = vld [vmem:[#allocation6] sm:$0xff]   ;;  %v2574_v5 = vld [vmem:[#allocation4 + $0x18] sm:$0xff]   ;;  %v3810_v53 = vmov 0   ;;  %vm1026_vm1 = vcmask 64512  }
  0x6e   :  { %2206 = vmatprep.subr.bf16.mxu1 %v3836_v0  ;;  %2222 = vmatprep.mubr.msk.bf16.mxu1 %vm2957_vm0, %v3836_v0  ;;  %3868 = vst [vmem:[#allocation16_spill] sm:$0xff] %v3138_v4  ;;  %v3142_v6 = vld [vmem:[#allocation6 + $0x8] sm:$0xff]   ;;  %v2575_v7 = vld [vmem:[#allocation4 + $0x20] sm:$0xff]   ;;  %v3147_v8 = vld [vmem:[#allocation6 + $0x10] sm:$0xff]  }
  0x6f   :  { %2187 = vmatpush3.bf16.msra.mxu0 %v2571_v1  ;;  %2207 = vmatpush3.bf16.msra.mxu1 %v3138_v4  ;;  %3869 = vst [vmem:[#allocation17_spill] sm:$0xff] %v3142_v6  ;;  %3870 = vst [vmem:[#allocation18_spill] sm:$0xff] %v3147_v8  ;;  %v2576_v9 = vld [vmem:[#allocation4 + $0x28] sm:$0xff]   ;;  %v3150_v10 = vld [vmem:[#allocation6 + $0x18] sm:$0xff]  }
  0x70   :  { %2188 = vmatprep.subr.bf16.mxu0 %v3836_v0  ;;  %2208 = vmatprep.subr.bf16.mxu1 %v3836_v0  ;;  %3871 = vst [vmem:[#allocation19_spill] sm:$0xff] %v3150_v10  ;;  %v2577_v11 = vld [vmem:[#allocation4 + $0x30] sm:$0xff]   ;;  %v3155_v12 = vld [vmem:[#allocation6 + $0x20] sm:$0xff]   ;;  %v2578_v13 = vld [vmem:[#allocation4 + $0x38] sm:$0xff]  }
  0x71   :  { %3872 = vst [vmem:[#allocation20_spill] sm:$0xff] %v3155_v12  ;;  %v3160_v14 = vld [vmem:[#allocation6 + $0x28] sm:$0xff]   ;;  %v2579_v15 = vld [vmem:[#allocation2] sm:$0xff]   ;;  %v3167_v16 = vld [vmem:[#allocation6 + $0x30] sm:$0xff]  }
  0x72   :  { %3873 = vst [vmem:[#allocation21_spill] sm:$0xff] %v3160_v14  ;;  %3874 = vst [vmem:[#allocation22_spill] sm:$0xff] %v3167_v16  ;;  %v3171_v17 = vld [vmem:[#allocation6 + $0x38] sm:$0xff]   ;;  %v3175_v18 = vld [vmem:[#allocation7 + $0x4] ss:$12 sps:$4 sm:$0xff]  }
  0x73   :  { %2189 = vmatpush3.bf16.msra.mxu0 %v2572_v2  ;;  %2209 = vmatpush3.bf16.msra.mxu1 %v3142_v6  ;;  %3875 = vst [vmem:[#allocation23_spill] sm:$0xff] %v3171_v17  ;;  %3876 = vst [vmem:[#allocation24_spill] sm:$0xff] %v3175_v18  ;;  %v3177_v19 = vld [vmem:[#allocation7] ss:$12 sps:$4 sm:$0xff]   ;;  %v3179_v20 = vld [vmem:[#allocation7 + $0x1c] ss:$12 sps:$4 sm:$0xff]  }
  0x74   :  { %2190 = vmatprep.subr.bf16.mxu0 %v3836_v0  ;;  %2210 = vmatprep.subr.bf16.mxu1 %v3836_v0  ;;  %v3183_v21 = vld [vmem:[#allocation7 + $0x18] ss:$12 sps:$4 sm:$0xff]   ;;  %v3186_v22 = vld [vmem:[#allocation7 + $0x34] ss:$12 sps:$4 sm:$0xff]   ;;  %v3189_v23 = vld [vmem:[#allocation7 + $0x30] ss:$12 sps:$4 sm:$0xff]  }
  0x75   :  { %v3192_v24 = vld [vmem:[#allocation7 + $0x4c] ss:$12 sps:$4 sm:$0xff]   ;;  %v3195_v25 = vld [vmem:[#allocation7 + $0x48] ss:$12 sps:$4 sm:$0xff]   ;;  %v3198_v26 = vld [vmem:[#allocation7 + $0x64] ss:$12 sps:$4 sm:$0xff]  }
  0x76   :  { %v3201_v27 = vld [vmem:[#allocation7 + $0x60] ss:$12 sps:$4 sm:$0xff]   ;;  %v3204_v28 = vld [vmem:[#allocation7 + $0x7c] ss:$12 sps:$4 sm:$0xff]   ;;  %v3207_v29 = vld [vmem:[#allocation7 + $0x78] ss:$12 sps:$4 sm:$0xff]  }
  0x77   :  { %2191 = vmatpush3.bf16.msra.mxu0 %v2573_v3  ;;  %2211 = vmatpush3.bf16.msra.mxu1 %v3147_v8  ;;  %v1934_v30 = vld [vmem:[%s3800_s2] ss:$0 sm:$0xff]  ;;  %v3220_v39 = vld [vmem:[#allocation7 + $0x8] ss:$12 sps:$4 sm:$0xff]   ;;  %v3230_v41 = vld [vmem:[#allocation7 + $0x20] ss:$12 sps:$4 sm:$0xff]  }
  0x78   :  { %2192 = vmatprep.subr.bf16.mxu0 %v3836_v0  ;;  %2212 = vmatprep.subr.bf16.mxu1 %v3836_v0  ;;  %v3236_v42 = vld [vmem:[#allocation7 + $0x38] ss:$12 sps:$4 sm:$0xff]   ;;  %v3240_v43 = vld [vmem:[#allocation7 + $0x50] ss:$12 sps:$4 sm:$0xff]   ;;  %v3244_v44 = vld [vmem:[#allocation7 + $0x68] ss:$12 sps:$4 sm:$0xff]  }
  0x79   :  { %v3248_v45 = vld [vmem:[#allocation7 + $0x80] ss:$12 sps:$4 sm:$0xff]   ;;  %v3255_v47 = vld [vmem:[#allocation7 + $0x90] ss:$12 sps:$4 sm:$0xff]   ;;  %v3257_v48 = vld [vmem:[#allocation7 + $0x98] ss:$12 sps:$4 sm:$0xff]  }
  0x7a   :  { %v3253_v46 = vld [vmem:[#allocation7 + $0x94] ss:$12 sps:$4 sm:$0xff]   ;;  %v3262_v49 = vld [vmem:[#allocation7 + $0xac] ss:$12 sps:$4 sm:$0xff]   ;;  %v3267_v51 = vld [vmem:[#allocation7 + $0xb0] ss:$12 sps:$4 sm:$0xff]  }
  0x7b   :  { %2193 = vmatpush3.bf16.msra.mxu0 %v2574_v5  ;;  %2213 = vmatpush3.bf16.msra.mxu1 %v3150_v10  ;;  %v3265_v50 = vld [vmem:[#allocation7 + $0xa8] ss:$12 sps:$4 sm:$0xff]   ;;  %v3272_v52 = vld [vmem:[#allocation9 + $0x4] ss:$12 sps:$4 sm:$0xff]   ;;  %v3280_v54 = vld [vmem:[%s3802_s4] ss:$0 sm:$0xff] }
  0x7c   :  { %2194 = vmatprep.subr.bf16.mxu0 %v3836_v0  ;;  %2214 = vmatprep.subr.bf16.mxu1 %v3836_v0  ;;  %v3284_v63 = vld [vmem:[#allocation9] ss:$12 sps:$4 sm:$0xff]   ;;  %v3286_v1 = vld [vmem:[#allocation9 + $0x8] ss:$12 sps:$4 sm:$0xff]   ;;  %v3292_v5 = vld [vmem:[#allocation9 + $0x18] ss:$12 sps:$4 sm:$0xff]  }
  0x7d   :  { %v3288_v3 = vld [vmem:[#allocation9 + $0x1c] ss:$12 sps:$4 sm:$0xff]  }
  0x7f   :  { %2195 = vmatpush3.bf16.msra.mxu0 %v2575_v7  ;;  %2215 = vmatpush3.bf16.msra.mxu1 %v3155_v12  ;;  %v3294_v7 = vld [vmem:[#allocation9 + $0x20] ss:$12 sps:$4 sm:$0xff]  }
  0x80   :  { %2196 = vmatprep.subr.bf16.mxu0 %v3836_v0  ;;  %2216 = vmatprep.subr.bf16.mxu1 %v3836_v0 }
  0x83   :  { %2197 = vmatpush3.bf16.msra.mxu0 %v2576_v9  ;;  %2217 = vmatpush3.bf16.msra.mxu1 %v3160_v14  ;;  %v3298_v9 = vld [vmem:[#allocation9 + $0x34] ss:$12 sps:$4 sm:$0xff]  }
  0x84   :  { %2198 = vmatprep.subr.bf16.mxu0 %v3836_v0  ;;  %2218 = vmatprep.subr.bf16.mxu1 %v3836_v0 }
  0x87   :  { %2199 = vmatpush3.bf16.msra.mxu0 %v2577_v11  ;;  %2219 = vmatpush3.bf16.msra.mxu1 %v3167_v16  ;;  %v3305_v11 = vld [vmem:[#allocation9 + $0x30] ss:$12 sps:$4 sm:$0xff]  }
  0x88   :  { %2200 = vmatprep.subr.bf16.mxu0 %v3836_v0  ;;  %2220 = vmatprep.subr.bf16.mxu1 %v3836_v0 }
  0x8b   :  { %2201 = vmatpush3.bf16.msra.mxu0 %v2578_v13  ;;  %2221 = vmatpush3.bf16.msra.mxu1 %v3171_v17  ;;  %v3307_v13 = vld [vmem:[#allocation9 + $0x38] ss:$12 sps:$4 sm:$0xff]  }
  0x8c   :  { %2226 = vmatprep.subr.bf16.mxu1 %v3836_v0  ;;  %598 = vmatprep.subr.bf16.mxu0 %v3175_v18 }
  0x8e   :  { %2203 = vmatmul.mubr.bf16.vlgmr.msra.gmra.mrb[0].mxu0 %v2579_v15  ;;  %v3311_v15 = vld [vmem:[#allocation9 + $0x4c] ss:$12 sps:$4 sm:$0xff]  }
  0x8f   :  { %599 = vmatpush1.bf16.msra.mxu0 %v3177_v19  ;;  %630 = vmatprep.mubr.bf16.mxu0 %v3810_v53 }
  0x90   :  { %600 = vmatprep.subr.bf16.mxu0 %v3179_v20 }
  0x93   :  { %601 = vmatpush1.bf16.msra.mxu0 %v3183_v21 }
  0x94   :  { %602 = vmatprep.subr.bf16.mxu0 %v3186_v22 }
  0x97   :  { %603 = vmatpush1.bf16.msra.mxu0 %v3189_v23 }
  0x98   :  { %604 = vmatprep.subr.bf16.mxu0 %v3192_v24 }
  0x9b   :  { %605 = vmatpush1.bf16.msra.mxu0 %v3195_v25 }
  0x9c   :  { %606 = vmatprep.subr.bf16.mxu0 %v3198_v26 }
  0x9f   :  { %607 = vmatpush1.bf16.msra.mxu0 %v3201_v27 }
  0xa0   :  { %608 = vmatprep.subr.bf16.mxu0 %v3204_v28 }
  0xa3   :  { %609 = vmatpush1.bf16.msra.mxu0 %v3207_v29 }
  0xa4   :  { %610 = vmatprep.subr.bf16.mxu0 %v3253_v46 }
  0xa7   :  { %611 = vmatpush1.bf16.msra.mxu0 %v3255_v47 }
  0xa8   :  { %612 = vmatprep.subr.bf16.mxu0 %v3262_v49 }
  0xab   :  { %613 = vmatpush1.bf16.msra.mxu0 %v3265_v50 }
  0xac   :  { %810 = vmatprep.subr.bf16.mxu0 %v3272_v52 }
 0x161   :  { %v368_v31 = vpop.f32.mrb[0].mxu0 }
 0x162   :  { %v3214_v32 = vadd.f32 %v1934_v30, %v368_v31  ;;  %v2204_v33 = vpop.f32.mrb[1].mxu0  ;;  %v3317_v31 = vld [vmem:[#allocation9 + $0x50] ss:$12 sps:$4 sm:$0xff]  }
 0x163   :  { %v371_v34 = vpop.f32.mrb[2].mxu0  ;;  %v3321_v33 = vld [vmem:[#allocation9 + $0x64] ss:$12 sps:$4 sm:$0xff]  }
 0x164   :  { %v3216_v35 = vadd.f32 %v1934_v30, %v371_v34  ;;  %v2205_v36 = vpop.f32.mrb[3].mxu0  ;;  %v3813_v37 = vmax.f32 %v3214_v32, 0.0  ;;  %v3315_v30 = vld [vmem:[#allocation9 + $0x48] ss:$12 sps:$4 sm:$0xff]   ;;  %3877 = vst [vmem:[#allocation25_spill] sm:$0xff] %v3321_v33 }
 0x165   :  { %v3325_v34 = vld [vmem:[#allocation9 + $0x60] ss:$12 sps:$4 sm:$0xff]   ;;  %v3327_v36 = vld [vmem:[#allocation9 + $0x68] ss:$12 sps:$4 sm:$0xff]  }
 0x166   :  { %v3812_v38 = vmax.f32 %v3216_v35, 0.0  ;;  %3878 = vst [vmem:[#allocation26_spill] sm:$0xff] %v3325_v34  ;;  %3879 = vst [vmem:[#allocation27_spill] sm:$0xff] %v3327_v36 }
 0x168   :  { %v3226_v40 = vpack.c.bf16 %v3812_v38, %v3813_v37  ;;  %v3395_v38 = vld [vmem:[#allocation10 + $0x10] sm:$0xff]   ;;  %v3399_v37 = vld [vmem:[#allocation10 + $0x18] sm:$0xff]  }
 0x169   :  { %3891 = vst [vmem:[#allocation39_spill] sm:$0xff] %v3395_v38  ;;  %3892 = vst [vmem:[#allocation40_spill] sm:$0xff] %v3399_v37 }
 0x16a   :  { %2223 = vmatmul.mubr.bf16.vlgmr.msra.gmra.mrb[0].mxu1 %v3226_v40 }
 0x16b   :  { %2227 = vmatpush3.bf16.msra.mxu1 %v3220_v39  ;;  %2242 = vmatprep.mubr.msk.bf16.mxu1 %vm2957_vm0, %v3836_v0 }
 0x16c   :  { %2228 = vmatprep.subr.bf16.mxu1 %v3836_v0 }
 0x16f   :  { %2229 = vmatpush3.bf16.msra.mxu1 %v3230_v41 }
 0x170   :  { %2230 = vmatprep.subr.bf16.mxu1 %v3836_v0 }
 0x173   :  { %2231 = vmatpush3.bf16.msra.mxu1 %v3236_v42 }
 0x174   :  { %2232 = vmatprep.subr.bf16.mxu1 %v3836_v0 }
 0x177   :  { %2233 = vmatpush3.bf16.msra.mxu1 %v3240_v43 }
 0x178   :  { %2234 = vmatprep.subr.bf16.mxu1 %v3836_v0 }
 0x17b   :  { %2235 = vmatpush3.bf16.msra.mxu1 %v3244_v44 }
 0x17c   :  { %2236 = vmatprep.subr.bf16.mxu1 %v3836_v0 }
 0x17f   :  { %2237 = vmatpush3.bf16.msra.mxu1 %v3248_v45 }
 0x180   :  { %2238 = vmatprep.subr.bf16.mxu1 %v3836_v0 }
 0x183   :  { %2239 = vmatpush3.bf16.msra.mxu1 %v3257_v48 }
 0x184   :  { %2240 = vmatprep.subr.bf16.mxu1 %v3836_v0 }
 0x187   :  { %2241 = vmatpush3.bf16.msra.mxu1 %v3267_v51 }
 0x188   :  { %2246 = vmatprep.subr.bf16.mxu1 %v3836_v0 }
 0x23d   :  { %v460_v55 = vpop.f32.mrb[0].mxu1 }
 0x23e   :  { %v461_v56 = vadd.f32 %v3280_v54, %v460_v55  ;;  %v2224_v57 = vpop.f32.mrb[1].mxu1  ;;  %v3331_v55 = vld [vmem:[#allocation9 + $0x7c] ss:$12 sps:$4 sm:$0xff]  }
 0x23f   :  { %v463_v58 = vpop.f32.mrb[2].mxu1  ;;  %3880 = vst [vmem:[#allocation28_spill] sm:$0xff] %v3331_v55  ;;  %v3337_v57 = vld [vmem:[#allocation9 + $0x80] ss:$12 sps:$4 sm:$0xff]  }
 0x240   :  { %v464_v59 = vadd.f32 %v3280_v54, %v463_v58  ;;  %v2225_v60 = vpop.f32.mrb[3].mxu1  ;;  %v467_v61 = vmax.f32 %v461_v56, 0.0  ;;  %v3335_v56 = vld [vmem:[#allocation9 + $0x78] ss:$12 sps:$4 sm:$0xff]   ;;  %3882 = vst [vmem:[#allocation30_spill] sm:$0xff] %v3337_v57 }
 0x241   :  { %3881 = vst [vmem:[#allocation29_spill] sm:$0xff] %v3335_v56  ;;  %v3341_v58 = vld [vmem:[#allocation9 + $0x94] ss:$12 sps:$4 sm:$0xff]   ;;  %v3347_v60 = vld [vmem:[#allocation9 + $0x98] ss:$12 sps:$4 sm:$0xff]  }
 0x242   :  { %v468_v62 = vmax.f32 %v464_v59, 0.0  ;;  %3883 = vst [vmem:[#allocation31_spill] sm:$0xff] %v3341_v58  ;;  %v3345_v59 = vld [vmem:[#allocation9 + $0x90] ss:$12 sps:$4 sm:$0xff]   ;;  %3885 = vst [vmem:[#allocation33_spill] sm:$0xff] %v3347_v60 }
 0x243   :  { %3884 = vst [vmem:[#allocation32_spill] sm:$0xff] %v3345_v59 }
 0x244   :  { %v469_v2 = vpack.c.bf16 %v468_v62, %v467_v61  ;;  %v3351_v61 = vld [vmem:[#allocation9 + $0xac] ss:$12 sps:$4 sm:$0xff]   ;;  %v3355_v62 = vld [vmem:[#allocation9 + $0xa8] ss:$12 sps:$4 sm:$0xff]  }
 0x245   :  { %3886 = vst [vmem:[#allocation34_spill] sm:$0xff] %v3351_v61  ;;  %3887 = vst [vmem:[#allocation35_spill] sm:$0xff] %v3355_v62 }
 0x246   :  { %631 = vmatmul.mubr.bf16.vlgmr.msra.gmra.mrb[4].mxu0 %v469_v2  ;;  %2243 = vmatmul.mubr.bf16.vlgmr.msra.gmra.mrb[4].mxu1 %v469_v2  ;;  %v3357_v2 = vld [vmem:[#allocation9 + $0xb0] ss:$12 sps:$4 sm:$0xff]  }
 0x247   :  { %811 = vmatpush1.bf16.msra.mxu0 %v3284_v63  ;;  %2247 = vmatpush3.bf16.msra.mxu1 %v3286_v1  ;;  %3888 = vst [vmem:[#allocation36_spill] sm:$0xff] %v3357_v2 }
 0x248   :  { %812 = vmatprep.subr.bf16.mxu0 %v3288_v3  ;;  %2248 = vmatprep.subr.bf16.mxu1 %v3836_v0 }
 0x249   :  { %842 = vmatprep.mubr.bf16.mxu0 %v3810_v53  ;;  %2262 = vmatprep.mubr.msk.bf16.mxu1 %vm2957_vm0, %v3836_v0  ;;  %v3391_v53 = vld [vmem:[#allocation10 + $0x8] sm:$0xff]  }
 0x24a   :  { %3890 = vst [vmem:[#allocation38_spill] sm:$0xff] %v3391_v53 }
 0x24b   :  { %813 = vmatpush1.bf16.msra.mxu0 %v3292_v5  ;;  %2249 = vmatpush3.bf16.msra.mxu1 %v3294_v7 }
 0x24c   :  { %814 = vmatprep.subr.bf16.mxu0 %v3298_v9  ;;  %2250 = vmatprep.subr.bf16.mxu1 %v3836_v0 }
 0x24f   :  { %815 = vmatpush1.bf16.msra.mxu0 %v3305_v11  ;;  %2251 = vmatpush3.bf16.msra.mxu1 %v3307_v13 }
 0x250   :  { %816 = vmatprep.subr.bf16.mxu0 %v3311_v15  ;;  %2252 = vmatprep.subr.bf16.mxu1 %v3836_v0 }
 0x253   :  { %817 = vmatpush1.bf16.msra.mxu0 %v3315_v30  ;;  %2253 = vmatpush3.bf16.msra.mxu1 %v3317_v31 }
 0x254   :  { %818 = vmatprep.subr.bf16.mxu0 %v3321_v33  ;;  %2254 = vmatprep.subr.bf16.mxu1 %v3836_v0 }
 0x257   :  { %819 = vmatpush1.bf16.msra.mxu0 %v3325_v34  ;;  %2255 = vmatpush3.bf16.msra.mxu1 %v3327_v36 }
 0x258   :  { %820 = vmatprep.subr.bf16.mxu0 %v3331_v55  ;;  %2256 = vmatprep.subr.bf16.mxu1 %v3836_v0 }
 0x25b   :  { %821 = vmatpush1.bf16.msra.mxu0 %v3335_v56  ;;  %2257 = vmatpush3.bf16.msra.mxu1 %v3337_v57 }
 0x25c   :  { %822 = vmatprep.subr.bf16.mxu0 %v3341_v58  ;;  %2258 = vmatprep.subr.bf16.mxu1 %v3836_v0 }
 0x25f   :  { %823 = vmatpush1.bf16.msra.mxu0 %v3345_v59  ;;  %2259 = vmatpush3.bf16.msra.mxu1 %v3347_v60 }
 0x260   :  { %824 = vmatprep.subr.bf16.mxu0 %v3351_v61  ;;  %2260 = vmatprep.subr.bf16.mxu1 %v3836_v0 }
 0x263   :  { %825 = vmatpush1.bf16.msra.mxu0 %v3355_v62  ;;  %2261 = vmatpush3.bf16.msra.mxu1 %v3357_v2 }
 0x264   :  { %2266 = vmatprep.subr.bf16.mxu0 %v3836_v0  ;;  %2286 = vmatprep.subr.bf16.mxu1 %v3836_v0 }
 0x266   :  { %843 = vmatmul.mubr.bf16.vlgmr.msra.gmra.mrb[4].mxu0 %v3226_v40  ;;  %2263 = vmatmul.mubr.bf16.vlgmr.msra.gmra.mrb[8].mxu1 %v3226_v40  ;;  %v3387_v40 = vld [vmem:[#allocation10] sm:$0xff]  }
 0x267   :  { %2287 = vmatpush3.bf16.msra.mxu1 %v3138_v4  ;;  %2282 = vmatprep.mubr.msk.bf16.mxu0 %vm2957_vm0, %v3836_v0  ;;  %3889 = vst [vmem:[#allocation37_spill] sm:$0xff] %v3387_v40 }
 0x268   :  { %2288 = vmatprep.subr.bf16.mxu1 %v3836_v0  ;;  %2302 = vmatprep.mubr.msk.bf16.mxu1 %vm2957_vm0, %v3836_v0 }
 0x269   :  { %2267 = vmatpush3.bf16.msra.mxu0 %v3387_v40 }
 0x26a   :  { %2268 = vmatprep.subr.bf16.mxu0 %v3836_v0 }
 0x26b   :  { %2289 = vmatpush3.bf16.msra.mxu1 %v3142_v6 }
 0x26c   :  { %2290 = vmatprep.subr.bf16.mxu1 %v3836_v0 }
 0x26d   :  { %2269 = vmatpush3.bf16.msra.mxu0 %v3391_v53  ;;  %v247_v53 = vld [vmem:[%s3804_s6] sm:$0x7] }
 0x26e   :  { %2270 = vmatprep.subr.bf16.mxu0 %v3836_v0 }
 0x26f   :  { %2291 = vmatpush3.bf16.msra.mxu1 %v3147_v8 }
 0x270   :  { %2292 = vmatprep.subr.bf16.mxu1 %v3836_v0 }
 0x271   :  { %2271 = vmatpush3.bf16.msra.mxu0 %v3395_v38  ;;  %v249_v38 = vlaneseq }
 0x272   :  { %2272 = vmatprep.subr.bf16.mxu0 %v3836_v0 }
 0x273   :  { %2293 = vmatpush3.bf16.msra.mxu1 %v3150_v10 }
 0x274   :  { %2294 = vmatprep.subr.bf16.mxu1 %v3836_v0 }
 0x275   :  { %2273 = vmatpush3.bf16.msra.mxu0 %v3399_v37 }
 0x276   :  { %2274 = vmatprep.subr.bf16.mxu0 %v3836_v0 }
 0x277   :  { %2295 = vmatpush3.bf16.msra.mxu1 %v3155_v12  ;;  %v3414_v12 = vld [vmem:[#allocation10 + $0x38] sm:$0xff]  }
 0x278   :  { %2296 = vmatprep.subr.bf16.mxu1 %v3836_v0  ;;  %3896 = vst [vmem:[#allocation44_spill] sm:$0xff] %v3414_v12 }
 0x27b   :  { %2297 = vmatpush3.bf16.msra.mxu1 %v3160_v14  ;;  %v3410_v14 = vld [vmem:[#allocation10 + $0x30] sm:$0xff]  }
 0x27c   :  { %2298 = vmatprep.subr.bf16.mxu1 %v3836_v0  ;;  %3895 = vst [vmem:[#allocation43_spill] sm:$0xff] %v3410_v14 }
 0x27f   :  { %2299 = vmatpush3.bf16.msra.mxu1 %v3167_v16  ;;  %v3406_v16 = vld [vmem:[#allocation10 + $0x28] sm:$0xff]  }
 0x280   :  { %2300 = vmatprep.subr.bf16.mxu1 %v3836_v0  ;;  %3894 = vst [vmem:[#allocation42_spill] sm:$0xff] %v3406_v16 }
 0x283   :  { %2301 = vmatpush3.bf16.msra.mxu1 %v3171_v17  ;;  %v3402_v17 = vld [vmem:[#allocation10 + $0x20] sm:$0xff]  }
 0x284   :  { %2306 = vmatprep.subr.bf16.mxu1 %v3836_v0  ;;  %3893 = vst [vmem:[#allocation41_spill] sm:$0xff] %v3402_v17  ;;  %2275 = vmatpush3.bf16.msra.mxu0 %v3402_v17 }
 0x285   :  { %2276 = vmatprep.subr.bf16.mxu0 %v3836_v0 }
 0x288   :  { %2277 = vmatpush3.bf16.msra.mxu0 %v3406_v16  ;;  %v250_v16 = vshrl.u32 %v249_v38, 7 }
 0x289   :  { %2278 = vmatprep.subr.bf16.mxu0 %v3836_v0 }
 0x28a   :  { %v251_v6 = vsub.s32 0, %v250_v16 }
 0x28c   :  { %2279 = vmatpush3.bf16.msra.mxu0 %v3410_v14  ;;  %v3422_v14 = vrot.slane %v247_v53, %v251_v6 }
 0x28d   :  { %2280 = vmatprep.subr.bf16.mxu0 %v3836_v0 }
 0x290   :  { %2281 = vmatpush3.bf16.msra.mxu0 %v3414_v12  ;;  %v255_v12 = vsub.s32 1, %v250_v16 }
 0x291   :  { %1073 = vmatprep.subr.bf16.mxu0 %v3175_v18 }
 0x292   :  { %v3426_v59 = vrot.slane %v247_v53, %v255_v12  ;;  %v3433_v12 = vld [vmem:[%s3806_s8] ss:$0 sm:$0xff] }
 0x293   :  { %3898 = vst [vmem:[#allocation46_spill] sm:$0xff] %v3433_v12 }
 0x294   :  { %3897 = vst [vmem:[#allocation45_spill] sm:$0xff] %v3426_v59 }
 0x319   :  { %v675_v17 = vpop.f32.mrb[4].mxu1 }
 0x31a   :  { %v2244_v10 = vpop.f32.mrb[5].mxu1 }
 0x31b   :  { %v678_v37 = vpop.f32.mrb[6].mxu1 }
 0x31c   :  { %v2245_v8 = vpop.f32.mrb[7].mxu1 }
 0x339   :  { %v844_v4 = vpop.f32.mrb[4].mxu0  ;;  %v887_v40 = vpop.f32.mrb[8].mxu1 }
 0x33a   :  { %v2526_v0 = vadd.f32 %v844_v4, %v3422_v14  ;;  %v846_v2 = vpop.f32.mrb[5].mxu0  ;;  %v2264_v18 = vpop.f32.mrb[9].mxu1 }
 0x33b   :  { %v848_v62 = vpop.f32.mrb[6].mxu0  ;;  %v890_v10 = vpop.f32.mrb[10].mxu1  ;;  %v2527_v6 = vadd.f32 %v846_v2, %v3426_v59 }
 0x33c   :  { %v2003_v61 = vmul.f32 -1.442695, %v2526_v0  ;;  %v2528_v8 = vadd.f32 %v848_v62, %v3422_v14  ;;  %v850_v38 = vpop.f32.mrb[7].mxu0  ;;  %v2265_v60 = vpop.f32.mrb[11].mxu1  ;;  %v922_v62 = vadd.f32 %v3433_v12, %v887_v40 }
 0x33d   :  { %v2529_v57 = vadd.f32 %v850_v38, %v3426_v59  ;;  %v2005_v4 = vmul.f32 -1.442695, %v2527_v6  ;;  %v259_v60 = vsub.s32 2, %v250_v16 }
 0x33e   :  { %2660 = vpow2.f32 %v2003_v61  ;;  %v2004_v58 = vmul.f32 -1.442695, %v2528_v8 }
 0x33f   :  { %v2006_v55 = vmul.f32 -1.442695, %v2529_v57 }
 0x340   :  { %2662 = vpow2.f32 %v2004_v58  ;;  %v3435_v58 = vrot.slane %v247_v53, %v259_v60  ;;  %v3899_v60 = vmax.f32 %v3214_v32, 0.0  ;;  %v3901_v32 = vmov 0.0  }
 0x341   :  { %2664 = vpow2.f32 %v2005_v4 }
 0x342   :  { %v679_v16 = vadd.f32 %v678_v37, %v3435_v58 }
 0x348   :  { %v2661_v56 = vpop.eup %2660 }
 0x349   :  { %v902_v18 = vadd.f32 1.0, %v2661_v56  ;;  %v676_v56 = vadd.f32 %v675_v17, %v3435_v58 }
 0x34a   :  { %v2663_v36 = vpop.eup %2662 }
 0x34b   :  { %2666 = vrcp.f32 %v902_v18  ;;  %v903_v0 = vadd.f32 1.0, %v2663_v36  ;;  %v2665_v61 = vpop.eup %2664  ;;  %v923_v36 = vadd.f32 %v3433_v12, %v890_v10  ;;  %v3900_v10 = vmax.f32 %v3216_v35, 0.0 }
 0x34c   :  { %2668 = vpow2.f32 %v2006_v55  ;;  %v916_v38 = vadd.f32 1.0, %v2665_v61  ;;  %v3902_v35 = vmov 0  }
 0x34d   :  { %2670 = vrcp.f32 %v903_v0 }
 0x355   :  { %v2667_v2 = vpop.eup %2666 }
 0x356   :  { %v2669_v57 = vpop.eup %2668  ;;  %v924_v8 = vmul.f32 %v2667_v2, %v922_v62 }
 0x357   :  { %v2671_v55 = vpop.eup %2670  ;;  %v917_v53 = vadd.f32 1.0, %v2669_v57 }
 0x358   :  { %v926_v6 = vadd.f32 %v924_v8, %v676_v56  ;;  %v925_v4 = vmul.f32 %v2671_v55, %v923_v36 }
 0x35a   :  { %2672 = vtanh.f32 %v926_v6  ;;  %v927_v18 = vadd.f32 %v925_v4, %v679_v16 }
 0x35b   :  { %2674 = vrcp.f32 %v916_v38 }
 0x35c   :  { %2676 = vtanh.f32 %v927_v18 }
 0x35d   :  { %2678 = vrcp.f32 %v917_v53 }
 0x364   :  { %v2673_v40 = vpop.eup %2672 }
 0x365   :  { %v2675_v0 = vpop.eup %2674  ;;  %v930_v17 = vsub.f32 %v3899_v60, %v2673_v40 }
 0x366   :  { %v2677_v62 = vpop.eup %2676 }
 0x367   :  { %v931_v2 = vsub.f32 %v3900_v10, %v2677_v62  ;;  %v932_v61 = vmul.f32 %v2675_v0, %v930_v17  ;;  %v2679_v12 = vpop.eup %2678 }
 0x369   :  { %v933_v37 = vmul.f32 %v2679_v12, %v931_v2  ;;  %v3445_v56 = vadd.f32 %v2673_v40, %v932_v61  ;;  %v3493_v12 = vld [vmem:[%s3808_s10] ss:$0 sm:$0xff] }
 0x36a   :  { %v3903_v61 = vld [vmem:[#allocation27_spill] sm:$0xff] }
 0x36b   :  { %v3447_v8 = vadd.f32 %v2677_v62, %v933_v37  ;;  %v3904_v37 = vld [vmem:[#allocation28_spill] sm:$0xff] }
 0x36d   :  { %v3451_v57 = vpack.c.bf16 %v3447_v8, %v3445_v56 }
 0x36f   :  { %2283 = vmatmul.mubr.bf16.vlgmr.msra.gmra.mrb[8].mxu0 %v3451_v57  ;;  %2303 = vmatmul.mubr.bf16.vlgmr.msra.gmra.mrb[12].mxu1 %v3451_v57 }
 0x370   :  { %1074 = vmatpush1.bf16.msra.mxu0 %v3177_v19  ;;  %2307 = vmatpush3.bf16.msra.mxu1 %v3220_v39 }
 0x371   :  { %1075 = vmatprep.subr.bf16.mxu0 %v3179_v20  ;;  %2308 = vmatprep.subr.bf16.mxu1 %v3901_v32 }
 0x372   :  { %1105 = vmatprep.mubr.bf16.mxu0 %v3902_v35  ;;  %2322 = vmatprep.mubr.msk.bf16.mxu1 %vm2957_vm0, %v3901_v32 }
 0x374   :  { %1076 = vmatpush1.bf16.msra.mxu0 %v3183_v21  ;;  %2309 = vmatpush3.bf16.msra.mxu1 %v3230_v41 }
 0x375   :  { %1077 = vmatprep.subr.bf16.mxu0 %v3186_v22  ;;  %2310 = vmatprep.subr.bf16.mxu1 %v3901_v32 }
 0x378   :  { %1078 = vmatpush1.bf16.msra.mxu0 %v3189_v23  ;;  %2311 = vmatpush3.bf16.msra.mxu1 %v3236_v42 }
 0x379   :  { %1079 = vmatprep.subr.bf16.mxu0 %v3192_v24  ;;  %2312 = vmatprep.subr.bf16.mxu1 %v3901_v32 }
 0x37c   :  { %1080 = vmatpush1.bf16.msra.mxu0 %v3195_v25  ;;  %2313 = vmatpush3.bf16.msra.mxu1 %v3240_v43 }
 0x37d   :  { %1081 = vmatprep.subr.bf16.mxu0 %v3198_v26  ;;  %2314 = vmatprep.subr.bf16.mxu1 %v3901_v32 }
 0x380   :  { %1082 = vmatpush1.bf16.msra.mxu0 %v3201_v27  ;;  %2315 = vmatpush3.bf16.msra.mxu1 %v3244_v44 }
 0x381   :  { %1083 = vmatprep.subr.bf16.mxu0 %v3204_v28  ;;  %2316 = vmatprep.subr.bf16.mxu1 %v3901_v32 }
 0x384   :  { %1084 = vmatpush1.bf16.msra.mxu0 %v3207_v29  ;;  %2317 = vmatpush3.bf16.msra.mxu1 %v3248_v45 }
 0x385   :  { %1085 = vmatprep.subr.bf16.mxu0 %v3253_v46  ;;  %2318 = vmatprep.subr.bf16.mxu1 %v3901_v32 }
 0x388   :  { %1086 = vmatpush1.bf16.msra.mxu0 %v3255_v47  ;;  %2319 = vmatpush3.bf16.msra.mxu1 %v3257_v48 }
 0x389   :  { %1087 = vmatprep.subr.bf16.mxu0 %v3262_v49  ;;  %2320 = vmatprep.subr.bf16.mxu1 %v3901_v32 }
 0x38c   :  { %1088 = vmatpush1.bf16.msra.mxu0 %v3265_v50  ;;  %2321 = vmatpush3.bf16.msra.mxu1 %v3267_v51 }
 0x38d   :  { %1157 = vmatprep.subr.bf16.mxu0 %v3272_v52  ;;  %2326 = vmatprep.subr.bf16.mxu1 %v3901_v32 }
 0x442   :  { %v1019_v36 = vpop.f32.mrb[8].mxu0  ;;  %v1063_v55 = vpop.f32.mrb[12].mxu1 }
 0x443   :  { %v1020_v38 = vadd.f32 %v3493_v12, %v1019_v36  ;;  %v1064_v16 = vadd.f32 %v3280_v54, %v1063_v55  ;;  %v2284_v6 = vpop.f32.mrb[9].mxu0  ;;  %v2304_v4 = vpop.f32.mrb[13].mxu1  ;;  %v3905_v36 = vld [vmem:[#allocation29_spill] sm:$0xff]  ;;  %v3906_v55 = vld [vmem:[#allocation30_spill] sm:$0xff] }
 0x444   :  { %v1022_v18 = vpop.f32.mrb[10].mxu0  ;;  %v1066_v53 = vpop.f32.mrb[14].mxu1  ;;  %v3909_v6 = vld [vmem:[#allocation33_spill] sm:$0xff]  ;;  %v3910_v4 = vld [vmem:[#allocation34_spill] sm:$0xff] }
 0x445   :  { %1027 = vst.msk [vmem:[%s3809_s11] sm:$0xff] %vm1026_vm1, %v1020_v38  ;;  %v1023_v40 = vadd.f32 %v3493_v12, %v1022_v18  ;;  %v1067_v0 = vadd.f32 %v3280_v54, %v1066_v53  ;;  %v2285_v60 = vpop.f32.mrb[11].mxu0  ;;  %v2305_v17 = vpop.f32.mrb[15].mxu1  ;;  %v1070_v62 = vmax.f32 %v1064_v16, 0.0  ;;  %v3907_v38 = vld [vmem:[#allocation31_spill] sm:$0xff]  ;;  %v3908_v16 = vld [vmem:[#allocation32_spill] sm:$0xff] }
 0x446   :  { %v3911_v18 = vld [vmem:[#allocation35_spill] sm:$0xff]  ;;  %v3912_v53 = vld [vmem:[#allocation36_spill] sm:$0xff]  ;;  %v3915_v60 = vld [vmem:[#allocation38_spill] sm:$0xff] }
 0x447   :  { %1028 = vst.msk [vmem:[%s3809_s11 + $0x8] sm:$0xff] %vm1026_vm1, %v1023_v40  ;;  %v1071_v10 = vmax.f32 %v1067_v0, 0.0  ;;  %v3913_v40 = vld [vmem:[#allocation37_spill] sm:$0xff]  ;;  %v3914_v0 = vld [vmem:[#allocation16_spill] sm:$0xff] }
 0x448   :  { %v3916_v17 = vld [vmem:[#allocation17_spill] sm:$0xff] }
 0x449   :  { %v1072_v2 = vpack.c.bf16 %v1071_v10, %v1070_v62  ;;  %v3918_v62 = vld [vmem:[#allocation18_spill] sm:$0xff]  ;;  %v3919_v10 = vld [vmem:[#allocation40_spill] sm:$0xff] }
 0x44b   :  { %1106 = vmatmul.mubr.bf16.vlgmr.msra.gmra.mrb[12].mxu0 %v1072_v2  ;;  %2323 = vmatmul.mubr.bf16.vlgmr.msra.gmra.mrb[16].mxu1 %v1072_v2  ;;  %v3920_v2 = vld [vmem:[#allocation19_spill] sm:$0xff] }
 0x44c   :  { %1158 = vmatpush1.bf16.msra.mxu0 %v3284_v63  ;;  %2327 = vmatpush3.bf16.msra.mxu1 %v3286_v1 }
 0x44d   :  { %1159 = vmatprep.subr.bf16.mxu0 %v3288_v3  ;;  %2328 = vmatprep.subr.bf16.mxu1 %v3901_v32 }
 0x44e   :  { %1189 = vmatprep.mubr.bf16.mxu0 %v3902_v35  ;;  %2342 = vmatprep.mubr.msk.bf16.mxu1 %vm2957_vm0, %v3901_v32 }
 0x450   :  { %1160 = vmatpush1.bf16.msra.mxu0 %v3292_v5  ;;  %2329 = vmatpush3.bf16.msra.mxu1 %v3294_v7 }
 0x451   :  { %1161 = vmatprep.subr.bf16.mxu0 %v3298_v9  ;;  %2330 = vmatprep.subr.bf16.mxu1 %v3901_v32 }
 0x454   :  { %1162 = vmatpush1.bf16.msra.mxu0 %v3305_v11  ;;  %2331 = vmatpush3.bf16.msra.mxu1 %v3307_v13 }
 0x455   :  { %1163 = vmatprep.subr.bf16.mxu0 %v3311_v15  ;;  %2332 = vmatprep.subr.bf16.mxu1 %v3901_v32 }
 0x458   :  { %1164 = vmatpush1.bf16.msra.mxu0 %v3315_v30  ;;  %2333 = vmatpush3.bf16.msra.mxu1 %v3317_v31 }
 0x459   :  { %1165 = vmatprep.subr.bf16.mxu0 %v3321_v33  ;;  %2334 = vmatprep.subr.bf16.mxu1 %v3901_v32 }
 0x45c   :  { %1166 = vmatpush1.bf16.msra.mxu0 %v3325_v34  ;;  %2335 = vmatpush3.bf16.msra.mxu1 %v3903_v61 }
 0x45d   :  { %1167 = vmatprep.subr.bf16.mxu0 %v3904_v37  ;;  %2336 = vmatprep.subr.bf16.mxu1 %v3901_v32 }
 0x460   :  { %1168 = vmatpush1.bf16.msra.mxu0 %v3905_v36  ;;  %2337 = vmatpush3.bf16.msra.mxu1 %v3906_v55 }
 0x461   :  { %1169 = vmatprep.subr.bf16.mxu0 %v3907_v38  ;;  %2338 = vmatprep.subr.bf16.mxu1 %v3901_v32 }
 0x464   :  { %1170 = vmatpush1.bf16.msra.mxu0 %v3908_v16  ;;  %2339 = vmatpush3.bf16.msra.mxu1 %v3909_v6 }
 0x465   :  { %1171 = vmatprep.subr.bf16.mxu0 %v3910_v4  ;;  %2340 = vmatprep.subr.bf16.mxu1 %v3901_v32 }
 0x468   :  { %1172 = vmatpush1.bf16.msra.mxu0 %v3911_v18  ;;  %2341 = vmatpush3.bf16.msra.mxu1 %v3912_v53 }
 0x469   :  { %2346 = vmatprep.subr.bf16.mxu0 %v3901_v32  ;;  %2366 = vmatprep.subr.bf16.mxu1 %v3901_v32 }
 0x46b   :  { %1190 = vmatmul.mubr.bf16.vlgmr.msra.gmra.mrb[12].mxu0 %v3451_v57  ;;  %2343 = vmatmul.mubr.bf16.vlgmr.msra.gmra.mrb[20].mxu1 %v3451_v57  ;;  %v3917_v57 = vld [vmem:[#allocation39_spill] sm:$0xff] }
 0x46c   :  { %2347 = vmatpush3.bf16.msra.mxu0 %v3913_v40  ;;  %2367 = vmatpush3.bf16.msra.mxu1 %v3914_v0  ;;  %v3921_v0 = vld [vmem:[#allocation41_spill] sm:$0xff] }
 0x46d   :  { %2348 = vmatprep.subr.bf16.mxu0 %v3901_v32  ;;  %2368 = vmatprep.subr.bf16.mxu1 %v3901_v32 }
 0x46e   :  { %2362 = vmatprep.mubr.msk.bf16.mxu0 %vm2957_vm0, %v3901_v32  ;;  %2382 = vmatprep.mubr.msk.bf16.mxu1 %vm2957_vm0, %v3901_v32 }
 0x470   :  { %2349 = vmatpush3.bf16.msra.mxu0 %v3915_v60  ;;  %2369 = vmatpush3.bf16.msra.mxu1 %v3916_v17  ;;  %v3922_v17 = vld [vmem:[#allocation20_spill] sm:$0xff] }
 0x471   :  { %2350 = vmatprep.subr.bf16.mxu0 %v3901_v32  ;;  %2370 = vmatprep.subr.bf16.mxu1 %v3901_v32  ;;  %v3929_v60 = vld [vmem:[#allocation24_spill] sm:$0xff] }
 0x474   :  { %2351 = vmatpush3.bf16.msra.mxu0 %v3917_v57  ;;  %2371 = vmatpush3.bf16.msra.mxu1 %v3918_v62  ;;  %v3923_v62 = vld [vmem:[#allocation42_spill] sm:$0xff]  ;;  %v3924_v57 = vld [vmem:[#allocation21_spill] sm:$0xff] }
 0x475   :  { %2352 = vmatprep.subr.bf16.mxu0 %v3901_v32  ;;  %2372 = vmatprep.subr.bf16.mxu1 %v3901_v32 }
 0x478   :  { %2353 = vmatpush3.bf16.msra.mxu0 %v3919_v10  ;;  %2373 = vmatpush3.bf16.msra.mxu1 %v3920_v2  ;;  %v3925_v2 = vld [vmem:[#allocation43_spill] sm:$0xff]  ;;  %v3926_v10 = vld [vmem:[#allocation22_spill] sm:$0xff] }
 0x479   :  { %2354 = vmatprep.subr.bf16.mxu0 %v3901_v32  ;;  %2374 = vmatprep.subr.bf16.mxu1 %v3901_v32 }
 0x47c   :  { %2355 = vmatpush3.bf16.msra.mxu0 %v3921_v0  ;;  %2375 = vmatpush3.bf16.msra.mxu1 %v3922_v17  ;;  %v3927_v17 = vld [vmem:[#allocation44_spill] sm:$0xff]  ;;  %v3928_v0 = vld [vmem:[#allocation23_spill] sm:$0xff] }
 0x47d   :  { %2356 = vmatprep.subr.bf16.mxu0 %v3901_v32  ;;  %2376 = vmatprep.subr.bf16.mxu1 %v3901_v32 }
 0x480   :  { %2357 = vmatpush3.bf16.msra.mxu0 %v3923_v62  ;;  %2377 = vmatpush3.bf16.msra.mxu1 %v3924_v57 }
 0x481   :  { %2358 = vmatprep.subr.bf16.mxu0 %v3901_v32  ;;  %2378 = vmatprep.subr.bf16.mxu1 %v3901_v32 }
 0x484   :  { %2359 = vmatpush3.bf16.msra.mxu0 %v3925_v2  ;;  %2379 = vmatpush3.bf16.msra.mxu1 %v3926_v10 }
 0x485   :  { %2360 = vmatprep.subr.bf16.mxu0 %v3901_v32  ;;  %2380 = vmatprep.subr.bf16.mxu1 %v3901_v32 }
 0x488   :  { %2361 = vmatpush3.bf16.msra.mxu0 %v3927_v17  ;;  %2381 = vmatpush3.bf16.msra.mxu1 %v3928_v0 }
 0x489   :  { %1372 = vmatprep.subr.bf16.mxu0 %v3929_v60  ;;  %2386 = vmatprep.subr.bf16.mxu1 %v3901_v32 }
 0x51e   :  { %v1150_v57 = vpop.f32.mrb[16].mxu1 }
 0x51f   :  { %v2324_v62 = vpop.f32.mrb[17].mxu1 }
 0x520   :  { %v1153_v40 = vpop.f32.mrb[18].mxu1 }
 0x521   :  { %v2325_v53 = vpop.f32.mrb[19].mxu1 }
 0x53e   :  { %v1191_v18 = vpop.f32.mrb[12].mxu0  ;;  %v1234_v2 = vpop.f32.mrb[20].mxu1 }
 0x53f   :  { %v2530_v10 = vadd.f32 %v1191_v18, %v3422_v14  ;;  %v1193_v4 = vpop.f32.mrb[13].mxu0  ;;  %v2344_v6 = vpop.f32.mrb[21].mxu1 }
 0x540   :  { %v1195_v16 = vpop.f32.mrb[14].mxu0  ;;  %v1237_v38 = vpop.f32.mrb[22].mxu1  ;;  %v2531_v62 = vadd.f32 %v1193_v4, %v3426_v59 }
 0x541   :  { %v2015_v55 = vmul.f32 -1.442695, %v2530_v10  ;;  %v2532_v17 = vadd.f32 %v1195_v16, %v3422_v14  ;;  %v1197_v0 = vpop.f32.mrb[15].mxu0  ;;  %v2345_v36 = vpop.f32.mrb[23].mxu1  ;;  %v3930_v10 = vld [vmem:[#allocation46_spill] sm:$0xff] }
 0x542   :  { %v2533_v53 = vadd.f32 %v1197_v0, %v3426_v59  ;;  %v2017_v37 = vmul.f32 -1.442695, %v2531_v62  ;;  %v1269_v36 = vadd.f32 %v3930_v10, %v1234_v2  ;;  %v1270_v0 = vadd.f32 %v3930_v10, %v1237_v38 }
 0x543   :  { %2680 = vpow2.f32 %v2015_v55  ;;  %v2016_v60 = vmul.f32 -1.442695, %v2532_v17 }
 0x544   :  { %v2018_v34 = vmul.f32 -1.442695, %v2533_v53 }
 0x545   :  { %2682 = vpow2.f32 %v2016_v60  ;;  %v1151_v60 = vadd.f32 %v1150_v57, %v3435_v58 }
 0x546   :  { %2684 = vpow2.f32 %v2017_v37 }
 0x54d   :  { %v2681_v61 = vpop.eup %2680 }
 0x54e   :  { %v1249_v18 = vadd.f32 1.0, %v2681_v61  ;;  %v1154_v61 = vadd.f32 %v1153_v40, %v3435_v58 }
 0x54f   :  { %v2683_v33 = vpop.eup %2682 }
 0x550   :  { %2686 = vrcp.f32 %v1249_v18  ;;  %v1250_v6 = vadd.f32 1.0, %v2683_v33  ;;  %v2685_v16 = vpop.eup %2684 }
 0x551   :  { %2688 = vpow2.f32 %v2018_v34  ;;  %v1263_v59 = vadd.f32 1.0, %v2685_v16 }
 0x552   :  { %2690 = vrcp.f32 %v1250_v6 }
 0x55a   :  { %v2687_v55 = vpop.eup %2686 }
 0x55b   :  { %v2689_v17 = vpop.eup %2688  ;;  %v1271_v4 = vmul.f32 %v2687_v55, %v1269_v36 }
 0x55c   :  { %v2691_v62 = vpop.eup %2690  ;;  %v1264_v34 = vadd.f32 1.0, %v2689_v17 }
 0x55d   :  { %v1273_v53 = vadd.f32 %v1271_v4, %v1151_v60  ;;  %v1272_v37 = vmul.f32 %v2691_v62, %v1270_v0  ;;  %v3949_v60 = vld [vmem:[#allocation43_spill] sm:$0xff]  ;;  %v2746_v4 = vld [vmem:[#allocation6 + $0x30] sm:$0xff]   ;;  %v3950_v0 = vld [vmem:[#allocation44_spill] sm:$0xff] }
 0x55e   :  { %v2747_v62 = vld [vmem:[#allocation6 + $0x38] sm:$0xff]  }
 0x55f   :  { %2692 = vtanh.f32 %v1273_v53  ;;  %v1274_v33 = vadd.f32 %v1272_v37, %v1154_v61  ;;  %v2748_v61 = vld [vmem:[#allocation7 + $0x4] ss:$12 sps:$4 sm:$0xff]  }
 0x560   :  { %2694 = vrcp.f32 %v1263_v59  ;;  %v2744_v59 = vld [vmem:[#allocation6 + $0x20] sm:$0xff]  }
 0x561   :  { %2696 = vtanh.f32 %v1274_v33 }
 0x562   :  { %2698 = vrcp.f32 %v1264_v34 }
 0x569   :  { %v2693_v2 = vpop.eup %2692 }
 0x56a   :  { %v2695_v18 = vpop.eup %2694  ;;  %v1277_v6 = vsub.f32 %v3445_v56, %v2693_v2  ;;  %v3948_v56 = vld [vmem:[#allocation42_spill] sm:$0xff] }
 0x56b   :  { %v2697_v57 = vpop.eup %2696 }
 0x56c   :  { %v1278_v36 = vsub.f32 %v3447_v8, %v2697_v57  ;;  %v1279_v38 = vmul.f32 %v2695_v18, %v1277_v6  ;;  %v2699_v55 = vpop.eup %2698  ;;  %v2745_v8 = vld [vmem:[#allocation6 + $0x28] sm:$0xff]  }
 0x56e   :  { %v1280_v16 = vmul.f32 %v2699_v55, %v1278_v36  ;;  %v3590_v10 = vadd.f32 %v2693_v2, %v1279_v38 }
 0x570   :  { %v3592_v40 = vadd.f32 %v2697_v57, %v1280_v16 }
 0x572   :  { %v3596_v17 = vpack.c.bf16 %v3592_v40, %v3590_v10 }
 0x574   :  { %2363 = vmatmul.mubr.bf16.vlgmr.msra.gmra.mrb[16].mxu0 %v3596_v17  ;;  %2383 = vmatmul.mubr.bf16.vlgmr.msra.gmra.mrb[24].mxu1 %v3596_v17 }
 0x575   :  { %1373 = vmatpush1.bf16.msra.mxu0 %v3177_v19  ;;  %2387 = vmatpush3.bf16.msra.mxu1 %v3220_v39 }
 0x576   :  { %1374 = vmatprep.subr.bf16.mxu0 %v3179_v20  ;;  %2388 = vmatprep.subr.bf16.mxu1 %v3901_v32 }
 0x577   :  { %1404 = vmatprep.mubr.bf16.mxu0 %v3902_v35  ;;  %2402 = vmatprep.mubr.msk.bf16.mxu1 %vm2957_vm0, %v3901_v32 }
 0x579   :  { %1375 = vmatpush1.bf16.msra.mxu0 %v3183_v21  ;;  %2389 = vmatpush3.bf16.msra.mxu1 %v3230_v41 }
 0x57a   :  { %1376 = vmatprep.subr.bf16.mxu0 %v3186_v22  ;;  %2390 = vmatprep.subr.bf16.mxu1 %v3901_v32 }
 0x57d   :  { %1377 = vmatpush1.bf16.msra.mxu0 %v3189_v23  ;;  %2391 = vmatpush3.bf16.msra.mxu1 %v3236_v42 }
 0x57e   :  { %1378 = vmatprep.subr.bf16.mxu0 %v3192_v24  ;;  %2392 = vmatprep.subr.bf16.mxu1 %v3901_v32 }
 0x581   :  { %1379 = vmatpush1.bf16.msra.mxu0 %v3195_v25  ;;  %2393 = vmatpush3.bf16.msra.mxu1 %v3240_v43 }
 0x582   :  { %1380 = vmatprep.subr.bf16.mxu0 %v3198_v26  ;;  %2394 = vmatprep.subr.bf16.mxu1 %v3901_v32 }
 0x585   :  { %1381 = vmatpush1.bf16.msra.mxu0 %v3201_v27  ;;  %2395 = vmatpush3.bf16.msra.mxu1 %v3244_v44  ;;  %v3931_v44 = vld [vmem:[#allocation25_spill] sm:$0xff] }
 0x586   :  { %1382 = vmatprep.subr.bf16.mxu0 %v3204_v28  ;;  %2396 = vmatprep.subr.bf16.mxu1 %v3901_v32 }
 0x589   :  { %1383 = vmatpush1.bf16.msra.mxu0 %v3207_v29  ;;  %2397 = vmatpush3.bf16.msra.mxu1 %v3248_v45  ;;  %v3932_v45 = vld [vmem:[#allocation26_spill] sm:$0xff] }
 0x58a   :  { %1384 = vmatprep.subr.bf16.mxu0 %v3253_v46  ;;  %2398 = vmatprep.subr.bf16.mxu1 %v3901_v32  ;;  %v3933_v46 = vld [vmem:[#allocation27_spill] sm:$0xff] }
 0x58d   :  { %1385 = vmatpush1.bf16.msra.mxu0 %v3255_v47  ;;  %2399 = vmatpush3.bf16.msra.mxu1 %v3257_v48  ;;  %v3934_v47 = vld [vmem:[#allocation28_spill] sm:$0xff]  ;;  %v3935_v48 = vld [vmem:[#allocation29_spill] sm:$0xff] }
 0x58e   :  { %1386 = vmatprep.subr.bf16.mxu0 %v3262_v49  ;;  %2400 = vmatprep.subr.bf16.mxu1 %v3901_v32  ;;  %v3936_v49 = vld [vmem:[#allocation30_spill] sm:$0xff] }
 0x591   :  { %1387 = vmatpush1.bf16.msra.mxu0 %v3265_v50  ;;  %2401 = vmatpush3.bf16.msra.mxu1 %v3267_v51  ;;  %v3937_v50 = vld [vmem:[#allocation31_spill] sm:$0xff]  ;;  %v3938_v51 = vld [vmem:[#allocation32_spill] sm:$0xff] }
 0x592   :  { %1456 = vmatprep.subr.bf16.mxu0 %v3272_v52  ;;  %2406 = vmatprep.subr.bf16.mxu1 %v3901_v32  ;;  %v3939_v52 = vld [vmem:[#allocation33_spill] sm:$0xff] }
 0x647   :  { %v1318_v19 = vpop.f32.mrb[16].mxu0  ;;  %v1362_v20 = vpop.f32.mrb[24].mxu1 }
 0x648   :  { %v1319_v21 = vadd.f32 %v3493_v12, %v1318_v19  ;;  %v1363_v22 = vadd.f32 %v3280_v54, %v1362_v20  ;;  %v2364_v23 = vpop.f32.mrb[17].mxu0  ;;  %v2384_v24 = vpop.f32.mrb[25].mxu1 }
 0x649   :  { %v1321_v25 = vpop.f32.mrb[18].mxu0  ;;  %v1365_v26 = vpop.f32.mrb[26].mxu1 }
 0x64a   :  { %2019 = vst.msk [vmem:[%s3809_s11 + $0x10] sm:$0xff] %vm1026_vm1, %v1319_v21  ;;  %v1322_v27 = vadd.f32 %v3493_v12, %v1321_v25  ;;  %v1366_v28 = vadd.f32 %v3280_v54, %v1365_v26  ;;  %v2365_v29 = vpop.f32.mrb[19].mxu0  ;;  %v2385_v39 = vpop.f32.mrb[27].mxu1  ;;  %v1369_v41 = vmax.f32 %v1363_v22, 0.0  ;;  %v3940_v54 = vld [vmem:[#allocation34_spill] sm:$0xff]  ;;  %v3951_v22 = vld [vmem:[#allocation45_spill] sm:$0xff] }
 0x64c   :  { %2020 = vst.msk [vmem:[%s3809_s11 + $0x18] sm:$0xff] %vm1026_vm1, %v1322_v27  ;;  %v1370_v42 = vmax.f32 %v1366_v28, 0.0 }
 0x64e   :  { %v1371_v43 = vpack.c.bf16 %v1370_v42, %v1369_v41  ;;  %v3952_v42 = vld [vmem:[#allocation46_spill] sm:$0xff] }
 0x650   :  { %1405 = vmatmul.mubr.bf16.vlgmr.msra.gmra.mrb[20].mxu0 %v1371_v43  ;;  %2403 = vmatmul.mubr.bf16.vlgmr.msra.gmra.mrb[28].mxu1 %v1371_v43 }
 0x651   :  { %1457 = vmatpush1.bf16.msra.mxu0 %v3284_v63  ;;  %2407 = vmatpush3.bf16.msra.mxu1 %v3286_v1  ;;  %v3941_v63 = vld [vmem:[#allocation35_spill] sm:$0xff]  ;;  %v3942_v1 = vld [vmem:[#allocation36_spill] sm:$0xff] }
 0x652   :  { %1458 = vmatprep.subr.bf16.mxu0 %v3288_v3  ;;  %2408 = vmatprep.subr.bf16.mxu1 %v3901_v32  ;;  %v3943_v3 = vld [vmem:[#allocation37_spill] sm:$0xff] }
 0x653   :  { %1488 = vmatprep.mubr.bf16.mxu0 %v3902_v35  ;;  %2422 = vmatprep.mubr.msk.bf16.mxu1 %vm2957_vm0, %v3901_v32 }
 0x655   :  { %1459 = vmatpush1.bf16.msra.mxu0 %v3292_v5  ;;  %2409 = vmatpush3.bf16.msra.mxu1 %v3294_v7  ;;  %v2740_v5 = vld [vmem:[#allocation6] sm:$0xff]   ;;  %v3944_v7 = vld [vmem:[#allocation38_spill] sm:$0xff] }
 0x656   :  { %1460 = vmatprep.subr.bf16.mxu0 %v3298_v9  ;;  %2410 = vmatprep.subr.bf16.mxu1 %v3901_v32  ;;  %v2741_v9 = vld [vmem:[#allocation6 + $0x8] sm:$0xff]  }
 0x659   :  { %1461 = vmatpush1.bf16.msra.mxu0 %v3305_v11  ;;  %2411 = vmatpush3.bf16.msra.mxu1 %v3307_v13  ;;  %v3945_v11 = vld [vmem:[#allocation39_spill] sm:$0xff]  ;;  %v2742_v13 = vld [vmem:[#allocation6 + $0x10] sm:$0xff]  }
 0x65a   :  { %1462 = vmatprep.subr.bf16.mxu0 %v3311_v15  ;;  %2412 = vmatprep.subr.bf16.mxu1 %v3901_v32  ;;  %v3946_v15 = vld [vmem:[#allocation40_spill] sm:$0xff] }
 0x65d   :  { %1463 = vmatpush1.bf16.msra.mxu0 %v3315_v30  ;;  %2413 = vmatpush3.bf16.msra.mxu1 %v3317_v31  ;;  %v2743_v30 = vld [vmem:[#allocation6 + $0x18] sm:$0xff]   ;;  %v3947_v31 = vld [vmem:[#allocation41_spill] sm:$0xff] }
 0x65e   :  { %1464 = vmatprep.subr.bf16.mxu0 %v3931_v44  ;;  %2414 = vmatprep.subr.bf16.mxu1 %v3901_v32 }
 0x661   :  { %1465 = vmatpush1.bf16.msra.mxu0 %v3932_v45  ;;  %2415 = vmatpush3.bf16.msra.mxu1 %v3933_v46 }
 0x662   :  { %1466 = vmatprep.subr.bf16.mxu0 %v3934_v47  ;;  %2416 = vmatprep.subr.bf16.mxu1 %v3901_v32 }
 0x665   :  { %1467 = vmatpush1.bf16.msra.mxu0 %v3935_v48  ;;  %2417 = vmatpush3.bf16.msra.mxu1 %v3936_v49 }
 0x666   :  { %1468 = vmatprep.subr.bf16.mxu0 %v3937_v50  ;;  %2418 = vmatprep.subr.bf16.mxu1 %v3901_v32 }
 0x669   :  { %1469 = vmatpush1.bf16.msra.mxu0 %v3938_v51  ;;  %2419 = vmatpush3.bf16.msra.mxu1 %v3939_v52 }
 0x66a   :  { %1470 = vmatprep.subr.bf16.mxu0 %v3940_v54  ;;  %2420 = vmatprep.subr.bf16.mxu1 %v3901_v32 }
 0x66d   :  { %1471 = vmatpush1.bf16.msra.mxu0 %v3941_v63  ;;  %2421 = vmatpush3.bf16.msra.mxu1 %v3942_v1 }
 0x66e   :  { %2426 = vmatprep.subr.bf16.mxu0 %v3901_v32  ;;  %2446 = vmatprep.subr.bf16.mxu1 %v3901_v32 }
 0x670   :  { %1489 = vmatmul.mubr.bf16.vlgmr.msra.gmra.mrb[20].mxu0 %v3596_v17  ;;  %2423 = vmatmul.mubr.bf16.vlgmr.msra.gmra.mrb[32].mxu1 %v3596_v17 }
 0x671   :  { %2427 = vmatpush3.bf16.msra.mxu0 %v3943_v3  ;;  %2447 = vmatpush3.bf16.msra.mxu1 %v2740_v5 }
 0x672   :  { %2428 = vmatprep.subr.bf16.mxu0 %v3901_v32  ;;  %2448 = vmatprep.subr.bf16.mxu1 %v3901_v32 }
 0x673   :  { %2442 = vmatprep.mubr.msk.bf16.mxu0 %vm2957_vm0, %v3901_v32  ;;  %2462 = vmatprep.mubr.msk.bf16.mxu1 %vm2957_vm0, %v3901_v32 }
 0x675   :  { %2429 = vmatpush3.bf16.msra.mxu0 %v3944_v7  ;;  %2449 = vmatpush3.bf16.msra.mxu1 %v2741_v9 }
 0x676   :  { %2430 = vmatprep.subr.bf16.mxu0 %v3901_v32  ;;  %2450 = vmatprep.subr.bf16.mxu1 %v3901_v32 }
 0x679   :  { %2431 = vmatpush3.bf16.msra.mxu0 %v3945_v11  ;;  %2451 = vmatpush3.bf16.msra.mxu1 %v2742_v13 }
 0x67a   :  { %2432 = vmatprep.subr.bf16.mxu0 %v3901_v32  ;;  %2452 = vmatprep.subr.bf16.mxu1 %v3901_v32 }
 0x67d   :  { %2433 = vmatpush3.bf16.msra.mxu0 %v3946_v15  ;;  %2453 = vmatpush3.bf16.msra.mxu1 %v2743_v30 }
 0x67e   :  { %2434 = vmatprep.subr.bf16.mxu0 %v3901_v32  ;;  %2454 = vmatprep.subr.bf16.mxu1 %v3901_v32 }
 0x681   :  { %2435 = vmatpush3.bf16.msra.mxu0 %v3947_v31  ;;  %2455 = vmatpush3.bf16.msra.mxu1 %v2744_v59 }
 0x682   :  { %2436 = vmatprep.subr.bf16.mxu0 %v3901_v32  ;;  %2456 = vmatprep.subr.bf16.mxu1 %v3901_v32 }
 0x685   :  { %2437 = vmatpush3.bf16.msra.mxu0 %v3948_v56  ;;  %2457 = vmatpush3.bf16.msra.mxu1 %v2745_v8  ;;  %v2749_v8 = vld [vmem:[#allocation7] ss:$12 sps:$4 sm:$0xff]  }
 0x686   :  { %2438 = vmatprep.subr.bf16.mxu0 %v3901_v32  ;;  %2458 = vmatprep.subr.bf16.mxu1 %v3901_v32 }
 0x689   :  { %2439 = vmatpush3.bf16.msra.mxu0 %v3949_v60  ;;  %2459 = vmatpush3.bf16.msra.mxu1 %v2746_v4  ;;  %v2752_v60 = vld [vmem:[#allocation7 + $0x18] ss:$12 sps:$4 sm:$0xff]   ;;  %v2753_v4 = vld [vmem:[#allocation7 + $0x20] ss:$12 sps:$4 sm:$0xff]  }
 0x68a   :  { %2440 = vmatprep.subr.bf16.mxu0 %v3901_v32  ;;  %2460 = vmatprep.subr.bf16.mxu1 %v3901_v32 }
 0x68d   :  { %2441 = vmatpush3.bf16.msra.mxu0 %v3950_v0  ;;  %2461 = vmatpush3.bf16.msra.mxu1 %v2747_v62  ;;  %v2754_v0 = vld [vmem:[#allocation7 + $0x34] ss:$12 sps:$4 sm:$0xff]   ;;  %v2755_v62 = vld [vmem:[#allocation7 + $0x30] ss:$12 sps:$4 sm:$0xff]  }
 0x68e   :  { %1671 = vmatprep.subr.bf16.mxu0 %v2748_v61  ;;  %2466 = vmatprep.subr.bf16.mxu1 %v3901_v32  ;;  %v2756_v61 = vld [vmem:[#allocation7 + $0x38] ss:$12 sps:$4 sm:$0xff]  }
 0x723   :  { %v1449_v53 = vpop.f32.mrb[28].mxu1 }
 0x724   :  { %v2404_v37 = vpop.f32.mrb[29].mxu1  ;;  %v1450_v46 = vadd.f32 %v1449_v53, %v3435_v58  ;;  %v2757_v53 = vld [vmem:[#allocation7 + $0x4c] ss:$12 sps:$4 sm:$0xff]  }
 0x725   :  { %v1452_v33 = vpop.f32.mrb[30].mxu1  ;;  %v2758_v37 = vld [vmem:[#allocation7 + $0x48] ss:$12 sps:$4 sm:$0xff]  }
 0x726   :  { %v2405_v34 = vpop.f32.mrb[31].mxu1  ;;  %v1453_v51 = vadd.f32 %v1452_v33, %v3435_v58  ;;  %v2759_v33 = vld [vmem:[#allocation7 + $0x50] ss:$12 sps:$4 sm:$0xff]  }
 0x727   :  { %v2760_v34 = vld [vmem:[#allocation7 + $0x64] ss:$12 sps:$4 sm:$0xff]  }
 0x743   :  { %v1490_v2 = vpop.f32.mrb[20].mxu0  ;;  %v1533_v18 = vpop.f32.mrb[32].mxu1 }
 0x744   :  { %v2534_v6 = vadd.f32 %v1490_v2, %v3422_v14  ;;  %v1492_v57 = vpop.f32.mrb[21].mxu0  ;;  %v2424_v36 = vpop.f32.mrb[33].mxu1  ;;  %v1568_v43 = vadd.f32 %v3952_v42, %v1533_v18  ;;  %v2761_v2 = vld [vmem:[#allocation7 + $0x60] ss:$12 sps:$4 sm:$0xff]   ;;  %v2762_v18 = vld [vmem:[#allocation7 + $0x68] ss:$12 sps:$4 sm:$0xff]  }
 0x745   :  { %v1494_v38 = vpop.f32.mrb[22].mxu0  ;;  %v1536_v55 = vpop.f32.mrb[34].mxu1  ;;  %v2535_v23 = vadd.f32 %v1492_v57, %v3951_v22  ;;  %v2764_v57 = vld [vmem:[#allocation7 + $0x78] ss:$12 sps:$4 sm:$0xff]   ;;  %v2765_v36 = vld [vmem:[#allocation7 + $0x80] ss:$12 sps:$4 sm:$0xff]  }
 0x746   :  { %v2021_v16 = vmul.f32 -1.442695, %v2534_v6  ;;  %v2536_v17 = vadd.f32 %v1494_v38, %v3422_v14  ;;  %v1496_v19 = vpop.f32.mrb[23].mxu0  ;;  %v2425_v20 = vpop.f32.mrb[35].mxu1  ;;  %v1569_v48 = vadd.f32 %v3952_v42, %v1536_v55  ;;  %v2763_v6 = vld [vmem:[#allocation7 + $0x7c] ss:$12 sps:$4 sm:$0xff]  }
 0x747   :  { %v2537_v24 = vadd.f32 %v1496_v19, %v3951_v22  ;;  %v2023_v25 = vmul.f32 -1.442695, %v2535_v23  ;;  %v2766_v38 = vld [vmem:[#allocation7 + $0x94] ss:$12 sps:$4 sm:$0xff]   ;;  %v2767_v55 = vld [vmem:[#allocation7 + $0x90] ss:$12 sps:$4 sm:$0xff]  }
 0x748   :  { %2700 = vpow2.f32 %v2021_v16  ;;  %v2022_v21 = vmul.f32 -1.442695, %v2536_v17  ;;  %v2768_v16 = vld [vmem:[#allocation7 + $0x98] ss:$12 sps:$4 sm:$0xff]   ;;  %v2770_v19 = vld [vmem:[#allocation7 + $0xa8] ss:$12 sps:$4 sm:$0xff]  }
 0x749   :  { %v2024_v27 = vmul.f32 -1.442695, %v2537_v24  ;;  %v2769_v17 = vld [vmem:[#allocation7 + $0xac] ss:$12 sps:$4 sm:$0xff]   ;;  %v2771_v20 = vld [vmem:[#allocation7 + $0xb0] ss:$12 sps:$4 sm:$0xff]  }
 0x74a   :  { %2702 = vpow2.f32 %v2022_v21  ;;  %v2772_v21 = vld [vmem:[#allocation9 + $0x4] ss:$12 sps:$4 sm:$0xff]  }
 0x74b   :  { %2704 = vpow2.f32 %v2023_v25 }
 0x752   :  { %v2701_v26 = vpop.eup %2700 }
 0x753   :  { %v1548_v28 = vadd.f32 1.0, %v2701_v26  ;;  %v2773_v26 = vld [vmem:[%s3802_s4] ss:$0 sm:$0xff] }
 0x754   :  { %v2703_v29 = vpop.eup %2702 }
 0x755   :  { %2706 = vrcp.f32 %v1548_v28  ;;  %v1549_v39 = vadd.f32 1.0, %v2703_v29  ;;  %v2705_v41 = vpop.eup %2704 }
 0x756   :  { %2708 = vpow2.f32 %v2024_v27  ;;  %v1562_v50 = vadd.f32 1.0, %v2705_v41 }
 0x757   :  { %2710 = vrcp.f32 %v1549_v39 }
 0x75f   :  { %v2707_v44 = vpop.eup %2706 }
 0x760   :  { %v2709_v45 = vpop.eup %2708  ;;  %v1570_v47 = vmul.f32 %v2707_v44, %v1568_v43 }
 0x761   :  { %v2711_v49 = vpop.eup %2710  ;;  %v1563_v1 = vadd.f32 1.0, %v2709_v45 }
 0x762   :  { %v1572_v52 = vadd.f32 %v1570_v47, %v1450_v46  ;;  %v1571_v54 = vmul.f32 %v2711_v49, %v1569_v48  ;;  %v2774_v49 = vld [vmem:[#allocation9] ss:$12 sps:$4 sm:$0xff]  }
 0x764   :  { %2712 = vtanh.f32 %v1572_v52  ;;  %v1573_v63 = vadd.f32 %v1571_v54, %v1453_v51  ;;  %v2776_v51 = vld [vmem:[#allocation9 + $0x1c] ss:$12 sps:$4 sm:$0xff]   ;;  %v2777_v52 = vld [vmem:[#allocation9 + $0x18] ss:$12 sps:$4 sm:$0xff]   ;;  %v2778_v54 = vld [vmem:[#allocation9 + $0x20] ss:$12 sps:$4 sm:$0xff]  }
 0x765   :  { %2714 = vrcp.f32 %v1562_v50  ;;  %v2775_v50 = vld [vmem:[#allocation9 + $0x8] ss:$12 sps:$4 sm:$0xff]  }
 0x766   :  { %2716 = vtanh.f32 %v1573_v63  ;;  %v2779_v63 = vld [vmem:[#allocation9 + $0x34] ss:$12 sps:$4 sm:$0xff]  }
 0x767   :  { %2718 = vrcp.f32 %v1563_v1  ;;  %v2780_v1 = vld [vmem:[#allocation9 + $0x30] ss:$12 sps:$4 sm:$0xff]  }
 0x76e   :  { %v2713_v3 = vpop.eup %2712 }
 0x76f   :  { %v2715_v5 = vpop.eup %2714  ;;  %v1576_v7 = vsub.f32 %v3590_v10, %v2713_v3  ;;  %v2750_v10 = vld [vmem:[#allocation7 + $0x8] ss:$12 sps:$4 sm:$0xff]  }
 0x770   :  { %v2717_v9 = vpop.eup %2716 }
 0x771   :  { %v1577_v11 = vsub.f32 %v3592_v40, %v2717_v9  ;;  %v1578_v13 = vmul.f32 %v2715_v5, %v1576_v7  ;;  %v2719_v15 = vpop.eup %2718  ;;  %v2751_v40 = vld [vmem:[#allocation7 + $0x1c] ss:$12 sps:$4 sm:$0xff]   ;;  %v2782_v5 = vld [vmem:[#allocation9 + $0x4c] ss:$12 sps:$4 sm:$0xff]  }
 0x772   :  { %v2784_v7 = vld [vmem:[#allocation9 + $0x50] ss:$12 sps:$4 sm:$0xff]  }
 0x773   :  { %v1579_v30 = vmul.f32 %v2719_v15, %v1577_v11  ;;  %v3721_v31 = vadd.f32 %v2713_v3, %v1578_v13  ;;  %v2781_v3 = vld [vmem:[#allocation9 + $0x38] ss:$12 sps:$4 sm:$0xff]   ;;  %v2786_v11 = vld [vmem:[#allocation9 + $0x60] ss:$12 sps:$4 sm:$0xff]   ;;  %v2787_v13 = vld [vmem:[#allocation9 + $0x68] ss:$12 sps:$4 sm:$0xff]  }
 0x774   :  { %v2788_v15 = vld [vmem:[#allocation9 + $0x7c] ss:$12 sps:$4 sm:$0xff]  }
 0x775   :  { %v3723_v59 = vadd.f32 %v2717_v9, %v1579_v30  ;;  %v2785_v9 = vld [vmem:[#allocation9 + $0x64] ss:$12 sps:$4 sm:$0xff]  }
 0x776   :  { %v2789_v30 = vld [vmem:[#allocation9 + $0x78] ss:$12 sps:$4 sm:$0xff]  }
 0x777   :  { %v3727_v56 = vpack.c.bf16 %v3723_v59, %v3721_v31 }
 0x779   :  { %2443 = vmatmul.mubr.bf16.vlgmr.msra.gmra.mrb[24].mxu0 %v3727_v56  ;;  %2463 = vmatmul.mubr.bf16.vlgmr.msra.gmra.mrb[36].mxu1 %v3727_v56 }
 0x77a   :  { %1672 = vmatpush1.bf16.msra.mxu0 %v2749_v8  ;;  %2467 = vmatpush3.bf16.msra.mxu1 %v2750_v10  ;;  %v2790_v8 = vld [vmem:[#allocation9 + $0x80] ss:$12 sps:$4 sm:$0xff]  }
 0x77b   :  { %1673 = vmatprep.subr.bf16.mxu0 %v2751_v40  ;;  %2468 = vmatprep.subr.bf16.mxu1 %v3901_v32  ;;  %v2791_v10 = vld [vmem:[#allocation9 + $0x94] ss:$12 sps:$4 sm:$0xff]   ;;  %v2792_v40 = vld [vmem:[#allocation9 + $0x90] ss:$12 sps:$4 sm:$0xff]  }
 0x77c   :  { %1703 = vmatprep.mubr.bf16.mxu0 %v3902_v35  ;;  %2482 = vmatprep.mubr.msk.bf16.mxu1 %vm2957_vm0, %v3901_v32 }
 0x77e   :  { %1674 = vmatpush1.bf16.msra.mxu0 %v2752_v60  ;;  %2469 = vmatpush3.bf16.msra.mxu1 %v2753_v4  ;;  %v2793_v60 = vld [vmem:[#allocation9 + $0x98] ss:$12 sps:$4 sm:$0xff]  }
 0x77f   :  { %1675 = vmatprep.subr.bf16.mxu0 %v2754_v0  ;;  %2470 = vmatprep.subr.bf16.mxu1 %v3901_v32  ;;  %v2794_v4 = vld [vmem:[#allocation9 + $0xac] ss:$12 sps:$4 sm:$0xff]   ;;  %v2795_v0 = vld [vmem:[#allocation9 + $0xa8] ss:$12 sps:$4 sm:$0xff]  }
 0x782   :  { %1676 = vmatpush1.bf16.msra.mxu0 %v2755_v62  ;;  %2471 = vmatpush3.bf16.msra.mxu1 %v2756_v61  ;;  %v2796_v62 = vld [vmem:[#allocation9 + $0xb0] ss:$12 sps:$4 sm:$0xff]   ;;  %v2797_v61 = vld [vmem:[#allocation10] sm:$0xff]  }
 0x783   :  { %1677 = vmatprep.subr.bf16.mxu0 %v2757_v53  ;;  %2472 = vmatprep.subr.bf16.mxu1 %v3901_v32  ;;  %v2798_v53 = vld [vmem:[#allocation10 + $0x8] sm:$0xff]  }
 0x786   :  { %1678 = vmatpush1.bf16.msra.mxu0 %v2758_v37  ;;  %2473 = vmatpush3.bf16.msra.mxu1 %v2759_v33  ;;  %v2799_v37 = vld [vmem:[#allocation10 + $0x10] sm:$0xff]   ;;  %v2800_v33 = vld [vmem:[#allocation10 + $0x18] sm:$0xff]  }
 0x787   :  { %1679 = vmatprep.subr.bf16.mxu0 %v2760_v34  ;;  %2474 = vmatprep.subr.bf16.mxu1 %v3901_v32  ;;  %v2802_v34 = vld [vmem:[#allocation10 + $0x28] sm:$0xff]  }
 0x78a   :  { %1680 = vmatpush1.bf16.msra.mxu0 %v2761_v2  ;;  %2475 = vmatpush3.bf16.msra.mxu1 %v2762_v18  ;;  %v2803_v2 = vld [vmem:[#allocation10 + $0x30] sm:$0xff]   ;;  %v2804_v18 = vld [vmem:[#allocation10 + $0x38] sm:$0xff]  }
 0x78b   :  { %1681 = vmatprep.subr.bf16.mxu0 %v2763_v6  ;;  %2476 = vmatprep.subr.bf16.mxu1 %v3901_v32 }
 0x78e   :  { %1682 = vmatpush1.bf16.msra.mxu0 %v2764_v57  ;;  %2477 = vmatpush3.bf16.msra.mxu1 %v2765_v36 }
 0x78f   :  { %1683 = vmatprep.subr.bf16.mxu0 %v2766_v38  ;;  %2478 = vmatprep.subr.bf16.mxu1 %v3901_v32 }
 0x792   :  { %1684 = vmatpush1.bf16.msra.mxu0 %v2767_v55  ;;  %2479 = vmatpush3.bf16.msra.mxu1 %v2768_v16 }
 0x793   :  { %1685 = vmatprep.subr.bf16.mxu0 %v2769_v17  ;;  %2480 = vmatprep.subr.bf16.mxu1 %v3901_v32 }
 0x796   :  { %1686 = vmatpush1.bf16.msra.mxu0 %v2770_v19  ;;  %2481 = vmatpush3.bf16.msra.mxu1 %v2771_v20 }
 0x797   :  { %1755 = vmatprep.subr.bf16.mxu0 %v2772_v21  ;;  %2486 = vmatprep.subr.bf16.mxu1 %v3901_v32 }
 0x84c   :  { %v1617_v23 = vpop.f32.mrb[24].mxu0  ;;  %v1661_v24 = vpop.f32.mrb[36].mxu1 }
 0x84d   :  { %v1618_v25 = vadd.f32 %v3493_v12, %v1617_v23  ;;  %v1662_v27 = vadd.f32 %v2773_v26, %v1661_v24  ;;  %v2444_v28 = vpop.f32.mrb[25].mxu0  ;;  %v2464_v29 = vpop.f32.mrb[37].mxu1 }
 0x84e   :  { %v1620_v39 = vpop.f32.mrb[26].mxu0  ;;  %v1664_v41 = vpop.f32.mrb[38].mxu1 }
 0x84f   :  { %2025 = vst.msk [vmem:[%s3809_s11 + $0x20] sm:$0xff] %vm1026_vm1, %v1618_v25  ;;  %v1621_v42 = vadd.f32 %v3493_v12, %v1620_v39  ;;  %v1665_v43 = vadd.f32 %v2773_v26, %v1664_v41  ;;  %v2445_v44 = vpop.f32.mrb[27].mxu0  ;;  %v2465_v45 = vpop.f32.mrb[39].mxu1  ;;  %v1668_v46 = vmax.f32 %v1662_v27, 0.0 }
 0x851   :  { %2026 = vst.msk [vmem:[%s3809_s11 + $0x28] sm:$0xff] %vm1026_vm1, %v1621_v42  ;;  %v1669_v47 = vmax.f32 %v1665_v43, 0.0 }
 0x853   :  { %v1670_v48 = vpack.c.bf16 %v1669_v47, %v1668_v46  ;;  %v2805_v46 = vld [vmem:[%s3806_s8] ss:$0 sm:$0xff] }
 0x855   :  { %1704 = vmatmul.mubr.bf16.vlgmr.msra.gmra.mrb[28].mxu0 %v1670_v48  ;;  %2483 = vmatmul.mubr.bf16.vlgmr.msra.gmra.mrb[40].mxu1 %v1670_v48 }
 0x856   :  { %1756 = vmatpush1.bf16.msra.mxu0 %v2774_v49  ;;  %2487 = vmatpush3.bf16.msra.mxu1 %v2775_v50 }
 0x857   :  { %1757 = vmatprep.subr.bf16.mxu0 %v2776_v51  ;;  %2488 = vmatprep.subr.bf16.mxu1 %v3901_v32 }
 0x858   :  { %1787 = vmatprep.mubr.bf16.mxu0 %v3902_v35  ;;  %2502 = vmatprep.mubr.msk.bf16.mxu1 %vm2957_vm0, %v3901_v32  ;;  %v2783_v35 = vld [vmem:[#allocation9 + $0x48] ss:$12 sps:$4 sm:$0xff]  }
 0x85a   :  { %1758 = vmatpush1.bf16.msra.mxu0 %v2777_v52  ;;  %2489 = vmatpush3.bf16.msra.mxu1 %v2778_v54 }
 0x85b   :  { %1759 = vmatprep.subr.bf16.mxu0 %v2779_v63  ;;  %2490 = vmatprep.subr.bf16.mxu1 %v3901_v32 }
 0x85e   :  { %1760 = vmatpush1.bf16.msra.mxu0 %v2780_v1  ;;  %2491 = vmatpush3.bf16.msra.mxu1 %v2781_v3 }
 0x85f   :  { %1761 = vmatprep.subr.bf16.mxu0 %v2782_v5  ;;  %2492 = vmatprep.subr.bf16.mxu1 %v3901_v32 }
 0x862   :  { %1762 = vmatpush1.bf16.msra.mxu0 %v2783_v35  ;;  %2493 = vmatpush3.bf16.msra.mxu1 %v2784_v7 }
 0x863   :  { %1763 = vmatprep.subr.bf16.mxu0 %v2785_v9  ;;  %2494 = vmatprep.subr.bf16.mxu1 %v3901_v32 }
 0x866   :  { %1764 = vmatpush1.bf16.msra.mxu0 %v2786_v11  ;;  %2495 = vmatpush3.bf16.msra.mxu1 %v2787_v13 }
 0x867   :  { %1765 = vmatprep.subr.bf16.mxu0 %v2788_v15  ;;  %2496 = vmatprep.subr.bf16.mxu1 %v3901_v32 }
 0x86a   :  { %1766 = vmatpush1.bf16.msra.mxu0 %v2789_v30  ;;  %2497 = vmatpush3.bf16.msra.mxu1 %v2790_v8 }
 0x86b   :  { %1767 = vmatprep.subr.bf16.mxu0 %v2791_v10  ;;  %2498 = vmatprep.subr.bf16.mxu1 %v3901_v32 }
 0x86e   :  { %1768 = vmatpush1.bf16.msra.mxu0 %v2792_v40  ;;  %2499 = vmatpush3.bf16.msra.mxu1 %v2793_v60 }
 0x86f   :  { %1769 = vmatprep.subr.bf16.mxu0 %v2794_v4  ;;  %2500 = vmatprep.subr.bf16.mxu1 %v3901_v32 }
 0x872   :  { %1770 = vmatpush1.bf16.msra.mxu0 %v2795_v0  ;;  %2501 = vmatpush3.bf16.msra.mxu1 %v2796_v62 }
 0x873   :  { %2506 = vmatprep.subr.bf16.mxu0 %v3901_v32 }
 0x875   :  { %1788 = vmatmul.mubr.bf16.vlgmr.msra.gmra.mrb[28].mxu0 %v3727_v56  ;;  %2503 = vmatmul.mubr.bf16.vlgmr.msra.gmra.mrb[44].mxu1 %v3727_v56  ;;  %v2801_v56 = vld [vmem:[#allocation10 + $0x20] sm:$0xff]  }
 0x876   :  { %2507 = vmatpush3.bf16.msra.mxu0 %v2797_v61  ;;  %2522 = vmatprep.mubr.msk.bf16.mxu0 %vm2957_vm0, %v3901_v32 }
 0x877   :  { %2508 = vmatprep.subr.bf16.mxu0 %v3901_v32 }
 0x87a   :  { %2509 = vmatpush3.bf16.msra.mxu0 %v2798_v53 }
 0x87b   :  { %2510 = vmatprep.subr.bf16.mxu0 %v3901_v32 }
 0x87e   :  { %2511 = vmatpush3.bf16.msra.mxu0 %v2799_v37 }
 0x87f   :  { %2512 = vmatprep.subr.bf16.mxu0 %v3901_v32 }
 0x882   :  { %2513 = vmatpush3.bf16.msra.mxu0 %v2800_v33 }
 0x883   :  { %2514 = vmatprep.subr.bf16.mxu0 %v3901_v32 }
 0x886   :  { %2515 = vmatpush3.bf16.msra.mxu0 %v2801_v56 }
 0x887   :  { %2516 = vmatprep.subr.bf16.mxu0 %v3901_v32 }
 0x88a   :  { %2517 = vmatpush3.bf16.msra.mxu0 %v2802_v34 }
 0x88b   :  { %2518 = vmatprep.subr.bf16.mxu0 %v3901_v32 }
 0x88e   :  { %2519 = vmatpush3.bf16.msra.mxu0 %v2803_v2 }
 0x88f   :  { %2520 = vmatprep.subr.bf16.mxu0 %v3901_v32 }
 0x892   :  { %2521 = vmatpush3.bf16.msra.mxu0 %v2804_v18 }
 0x928   :  { %v1748_v6 = vpop.f32.mrb[40].mxu1 }
 0x929   :  { %v2484_v57 = vpop.f32.mrb[41].mxu1 }
 0x92a   :  { %v1751_v36 = vpop.f32.mrb[42].mxu1 }
 0x92b   :  { %v2485_v38 = vpop.f32.mrb[43].mxu1  ;;  %v1752_v63 = vadd.f32 %v1751_v36, %v3435_v58 }
 0x948   :  { %v1789_v55 = vpop.f32.mrb[28].mxu0  ;;  %v1832_v16 = vpop.f32.mrb[44].mxu1 }
 0x949   :  { %v2538_v17 = vadd.f32 %v1789_v55, %v3422_v14  ;;  %v1791_v19 = vpop.f32.mrb[29].mxu0  ;;  %v2504_v20 = vpop.f32.mrb[45].mxu1  ;;  %v1867_v47 = vadd.f32 %v2805_v46, %v1832_v16 }
 0x94a   :  { %v1793_v21 = vpop.f32.mrb[30].mxu0  ;;  %v1835_v23 = vpop.f32.mrb[46].mxu1  ;;  %v2539_v28 = vadd.f32 %v1791_v19, %v3951_v22 }
 0x94b   :  { %v2027_v24 = vmul.f32 -1.442695, %v2538_v17  ;;  %v2540_v25 = vadd.f32 %v1793_v21, %v3422_v14  ;;  %v1795_v26 = vpop.f32.mrb[31].mxu0  ;;  %v2505_v27 = vpop.f32.mrb[47].mxu1  ;;  %v1868_v51 = vadd.f32 %v2805_v46, %v1835_v23 }
 0x94c   :  { %v2541_v29 = vadd.f32 %v1795_v26, %v3951_v22  ;;  %v2029_v39 = vmul.f32 -1.442695, %v2539_v28  ;;  %v1749_v22 = vadd.f32 %v1748_v6, %v3435_v58 }
 0x94d   :  { %2720 = vpow2.f32 %v2027_v24  ;;  %v2028_v32 = vmul.f32 -1.442695, %v2540_v25 }
 0x94e   :  { %v2030_v42 = vmul.f32 -1.442695, %v2541_v29 }
 0x94f   :  { %2722 = vpow2.f32 %v2028_v32 }
 0x950   :  { %2724 = vpow2.f32 %v2029_v39 }
 0x957   :  { %v2721_v41 = vpop.eup %2720 }
 0x958   :  { %v1847_v43 = vadd.f32 1.0, %v2721_v41 }
 0x959   :  { %v2723_v44 = vpop.eup %2722 }
 0x95a   :  { %2726 = vrcp.f32 %v1847_v43  ;;  %v1848_v45 = vadd.f32 1.0, %v2723_v44  ;;  %v2725_v14 = vpop.eup %2724 }
 0x95b   :  { %2728 = vpow2.f32 %v2030_v42  ;;  %v1861_v54 = vadd.f32 1.0, %v2725_v14 }
 0x95c   :  { %2730 = vrcp.f32 %v1848_v45 }
 0x964   :  { %v2727_v48 = vpop.eup %2726 }
 0x965   :  { %v2729_v49 = vpop.eup %2728  ;;  %v1869_v50 = vmul.f32 %v2727_v48, %v1867_v47 }
 0x966   :  { %v2731_v52 = vpop.eup %2730  ;;  %v1862_v35 = vadd.f32 1.0, %v2729_v49 }
 0x967   :  { %v1871_v1 = vadd.f32 %v1869_v50, %v1749_v22  ;;  %v1870_v3 = vmul.f32 %v2731_v52, %v1868_v51 }
 0x969   :  { %2732 = vtanh.f32 %v1871_v1  ;;  %v1872_v5 = vadd.f32 %v1870_v3, %v1752_v63 }
 0x96a   :  { %2734 = vrcp.f32 %v1861_v54 }
 0x96b   :  { %2736 = vtanh.f32 %v1872_v5 }
 0x96c   :  { %2738 = vrcp.f32 %v1862_v35 }
 0x973   :  { %v2733_v7 = vpop.eup %2732 }
 0x974   :  { %v2735_v9 = vpop.eup %2734  ;;  %v1875_v11 = vsub.f32 %v3721_v31, %v2733_v7 }
 0x975   :  { %v2737_v13 = vpop.eup %2736 }
 0x976   :  { %v1876_v15 = vsub.f32 %v3723_v59, %v2737_v13  ;;  %v1877_v30 = vmul.f32 %v2735_v9, %v1875_v11  ;;  %v2739_v8 = vpop.eup %2738 }
 0x978   :  { %v1878_v10 = vmul.f32 %v2739_v8, %v1876_v15  ;;  %v1879_v40 = vadd.f32 %v2733_v7, %v1877_v30 }
 0x97a   :  { %v1880_v58 = vadd.f32 %v2737_v13, %v1878_v10 }
 0x97c   :  { %v1881_v60 = vpack.c.bf16 %v1880_v58, %v1879_v40 }
 0x97e   :  { %2523 = vmatmul.mubr.bf16.vlgmr.msra.gmra.mrb[32].mxu0 %v1881_v60 }
 0xa51   :  { %v1916_v4 = vpop.f32.mrb[32].mxu0 }
 0xa52   :  { %v1917_v0 = vadd.f32 %v3493_v12, %v1916_v4  ;;  %v2524_v62 = vpop.f32.mrb[33].mxu0 }
 0xa53   :  { %v1919_v61 = vpop.f32.mrb[34].mxu0 }
 0xa54   :  { %2031 = vst.msk [vmem:[%s3809_s11 + $0x30] sm:$0xff] %vm1026_vm1, %v1917_v0  ;;  %v1920_v31 = vadd.f32 %v3493_v12, %v1919_v61  ;;  %v2525_v59 = vpop.f32.mrb[35].mxu0 }
 0xa56   :  { %2032 = vst.msk [vmem:[%s3809_s11 + $0x38] sm:$0xff] %vm1026_vm1, %v1920_v31 }
 0xa57   :  { %1930 = vsyncpa [#allocation3], 1 }
 0xa58   :  { %1931 = vsyncpa [#allocation5], 1 }
 0xa59   :  { %1932 = vsyncpa [#allocation8], 1 }
 0xa5a   :  { %1933 = vsyncpa [#allocation11], 1 }

</bundles_post_ra>
